<compile_context>
chip_gen: v7x
topology: tpu7x:2x2x1
jax: 0.10.0
libtpu: 0.0.40
codegen_flags: <defaults>
</compile_context>

<pallas_src>
import jax
import jax.numpy as jnp
from jax.experimental import pallas as pl
from jax.experimental.pallas import tpu as pltpu


def _mlp_kernel(x_ref, w1_ref, b1_ref, w2_ref, b2_ref,
                w3_ref, b3_ref, w4_ref, b4_ref, o_ref):
    # x: (tm, 8) bf16 (cols 3..7 are zero-padded); weights VMEM-resident bf16.
    x = x_ref[...]
    w1 = w1_ref[...]                                  # (8, 128) bf16

    # Layer 1 (in=3): VPU broadcast multiply-adds instead of a K=8 MXU matmul.
    h = (x[:, 0:1] * w1[0:1, :]
         + x[:, 1:2] * w1[1:2, :]
         + x[:, 2:3] * w1[2:3, :]) + b1_ref[...]
    h = jnp.maximum(h, 0)                             # bf16 ReLU

    # Layer 2: 128 -> 512 on the MXU (f32 accumulation), bf16 epilogue.
    h = jnp.dot(h, w2_ref[...], preferred_element_type=jnp.float32)
    h = jnp.maximum(h.astype(jnp.bfloat16) + b2_ref[...], 0)

    # Layer 3: 512 -> 128.
    h = jnp.dot(h, w3_ref[...], preferred_element_type=jnp.float32)
    h = jnp.maximum(h.astype(jnp.bfloat16) + b3_ref[...], 0)

    # Layer 4: 128 -> 36 (padded to 128 output lanes -> lane-dense store).
    out = jnp.dot(h, w4_ref[...], preferred_element_type=jnp.float32)
    o_ref[...] = out.astype(jnp.bfloat16) + b4_ref[...]


def _pick_tm(n, tm_max=2048):
    """Largest power-of-two tile in [256, tm_max] keeping >= ~4 grid steps
    when the batch allows it (so v7x's two TCs both get work)."""
    tm = 256
    while tm < tm_max and tm * 4 <= n:
        tm *= 2
    return tm


def mlps_forward(x, params, *, tm=None):
    """x: [N, 3] float32 (any N). Returns [N, 36] float32."""
    (w1, b1), (w2, b2), (w3, b3), (w4, b4) = params
    N, F = x.shape
    assert F == 3

    if tm is None:
        tm = _pick_tm(N)

    # --- host-side padding / layout plumbing -------------------------------
    n_pad = pl.cdiv(N, tm) * tm
    # Batch padded to a tile multiple; features padded 3 -> 8; bf16 input DMA.
    x_p = jnp.zeros((n_pad, 8), jnp.bfloat16).at[:N, :3].set(x.astype(jnp.bfloat16))
    w1_p = jnp.zeros((8, 128), jnp.bfloat16).at[:3, :].set(w1.astype(jnp.bfloat16))
    # Lane-dense output: layer-4 padded to 128 output lanes (cols 36..127 = 0).
    w4_p = jnp.zeros((128, 128), jnp.bfloat16).at[:, :36].set(w4.astype(jnp.bfloat16))
    b4_p = jnp.zeros((1, 128), jnp.bfloat16).at[:, :36].set(b4.astype(jnp.bfloat16))
    w2_b, w3_b = w2.astype(jnp.bfloat16), w3.astype(jnp.bfloat16)
    b1_b, b2_b, b3_b = (b1.astype(jnp.bfloat16), b2.astype(jnp.bfloat16),
                        b3.astype(jnp.bfloat16))

    def full_spec(shape):
        # Whole-array block, same block every grid step (stays VMEM-resident).
        nd = len(shape)
        return pl.BlockSpec(shape, lambda i, _nd=nd: (0,) * _nd)

    grid_spec = pltpu.PrefetchScalarGridSpec(
        num_scalar_prefetch=0,
        grid=(n_pad // tm,),
        in_specs=[
            pl.BlockSpec((tm, 8), lambda i: (i, 0)),      # x tile
            full_spec(w1_p.shape), full_spec(b1_b.shape),
            full_spec(w2_b.shape), full_spec(b2_b.shape),
            full_spec(w3_b.shape), full_spec(b3_b.shape),
            full_spec(w4_p.shape), full_spec(b4_p.shape),
        ],
        out_specs=pl.BlockSpec((tm, 128), lambda i: (i, 0)),
    )

    # Advisory cost hint for the XLA scheduler.
    flops = 2 * n_pad * (3 * 128 + 128 * 512 + 512 * 128 + 128 * 36)
    weight_bytes = 2 * (w1_p.size + w2_b.size + w3_b.size + w4_p.size
                        + b1_b.size + b2_b.size + b3_b.size + b4_p.size)
    cost = pl.CostEstimate(
        flops=flops,
        transcendentals=0,
        bytes_accessed=n_pad * 8 * 2 + n_pad * 128 * 2 + weight_bytes,
    )

    out = pl.pallas_call(
        _mlp_kernel,
        out_shape=jax.ShapeDtypeStruct((n_pad, 128), jnp.bfloat16),
        grid_spec=grid_spec,
        compiler_params=pltpu.CompilerParams(
            dimension_semantics=("parallel",),
            vmem_limit_bytes=32 * 1024 * 1024,   # fits v7x's 64 MiB VMEM/TC
        ),
        cost_estimate=cost,
    )(x_p, w1_p, b1_b, w2_b, b2_b, w3_b, b3_b, w4_p, b4_p)

    return out[:N, :36].astype(jnp.float32)


def init_params(key):
    """Matches the PyTorch module: Xavier-uniform weights (explicit in the
    module), PyTorch-Linear-default uniform biases. Stored transposed as
    (in_features, out_features) so the kernel computes x @ W + b."""
    sizes = [(3, 128), (128, 512), (512, 128), (128, 36)]
    params = []
    for (fan_in, fan_out) in sizes:
        key, kw, kb = jax.random.split(key, 3)
        limit = jnp.sqrt(6.0 / (fan_in + fan_out))
        w = jax.random.uniform(kw, (fan_in, fan_out), jnp.float32, -limit, limit)
        blim = 1.0 / jnp.sqrt(float(fan_in))
        b = jax.random.uniform(kb, (1, fan_out), jnp.float32, -blim, blim)
        params.append((w, b))
    return params


def reference_forward(x, params):
    """Pure-JAX reference mirroring the kernel's numerics (bf16 inputs,
    f32 MXU accumulation, bf16 bias/ReLU epilogue, bf16 layer-1 mul-adds)."""
    (w1, b1), (w2, b2), (w3, b3), (w4, b4) = params
    xb = x.astype(jnp.bfloat16)
    w1b, b1b = w1.astype(jnp.bfloat16), b1.astype(jnp.bfloat16)

    h = (xb[:, 0:1] * w1b[0:1, :]
         + xb[:, 1:2] * w1b[1:2, :]
         + xb[:, 2:3] * w1b[2:3, :]) + b1b
    h = jnp.maximum(h, 0)

    def layer(h, w, b, relu):
        y = jnp.dot(h, w.astype(jnp.bfloat16),
                    preferred_element_type=jnp.float32)
        y = y.astype(jnp.bfloat16) + b.astype(jnp.bfloat16)
        return jnp.maximum(y, 0) if relu else y

    h = layer(h, w2, b2, True)
    h = layer(h, w3, b3, True)
    out = layer(h, w4, b4, False)
    return out.astype(jnp.float32)


if __name__ == "__main__":
    key = jax.random.PRNGKey(0)
    key, kx = jax.random.split(key)
    params = init_params(key)

    N = 1000  # not a multiple of the batch tile -> exercises padding path
    x = jax.random.normal(kx, (N, 3), jnp.float32)

    out = mlps_forward(x, params)
    out = jax.block_until_ready(out)

    ref = reference_forward(x, params)
    assert out.shape == (N, 36)
    assert jnp.allclose(out, ref, atol=2e-2, rtol=2e-2), \
        float(jnp.max(jnp.abs(out - ref)))

    print("KERNEL_OK")
</pallas_src>

<mosaic_0001>
module attributes {stable_mosaic.version = 11 : i64} {
  func.func @_mlp_kernel(%arg0: i32, %arg1: memref<256x8xbf16, #tpu.memory_space<vmem>>, %arg2: memref<8x128xbf16, #tpu.memory_space<vmem>>, %arg3: memref<1x128xbf16, #tpu.memory_space<vmem>>, %arg4: memref<128x512xbf16, #tpu.memory_space<vmem>>, %arg5: memref<1x512xbf16, #tpu.memory_space<vmem>>, %arg6: memref<512x128xbf16, #tpu.memory_space<vmem>>, %arg7: memref<1x128xbf16, #tpu.memory_space<vmem>>, %arg8: memref<128x128xbf16, #tpu.memory_space<vmem>>, %arg9: memref<1x128xbf16, #tpu.memory_space<vmem>>, %arg10: memref<256x128xbf16, #tpu.memory_space<vmem>>) attributes {dimension_semantics = [#tpu.dimension_semantics<parallel>], iteration_bounds = array<i64: 4>, scalar_prefetch = 0 : i64, scratch_operands = 0 : i64, tpu.core_type = #tpu.core_type<tc>, window_params = [{transform_indices = @transform_0, window_bounds = array<i64: 256, 8>}, {pipeline_mode = #tpu.pipeline_mode<synchronous>, transform_indices = @transform_1, window_bounds = array<i64: 8, 128>}, {pipeline_mode = #tpu.pipeline_mode<synchronous>, transform_indices = @transform_2, window_bounds = array<i64: 1, 128>}, {pipeline_mode = #tpu.pipeline_mode<synchronous>, transform_indices = @transform_3, window_bounds = array<i64: 128, 512>}, {pipeline_mode = #tpu.pipeline_mode<synchronous>, transform_indices = @transform_4, window_bounds = array<i64: 1, 512>}, {pipeline_mode = #tpu.pipeline_mode<synchronous>, transform_indices = @transform_5, window_bounds = array<i64: 512, 128>}, {pipeline_mode = #tpu.pipeline_mode<synchronous>, transform_indices = @transform_6, window_bounds = array<i64: 1, 128>}, {pipeline_mode = #tpu.pipeline_mode<synchronous>, transform_indices = @transform_7, window_bounds = array<i64: 128, 128>}, {pipeline_mode = #tpu.pipeline_mode<synchronous>, transform_indices = @transform_8, window_bounds = array<i64: 1, 128>}, {transform_indices = @transform_9, window_bounds = array<i64: 256, 128>}]} {
    %c0 = arith.constant 0 : index
    %c0_0 = arith.constant 0 : index
    %0 = vector.load %arg1[%c0, %c0_0] : memref<256x8xbf16, #tpu.memory_space<vmem>>, vector<256x8xbf16>
    %c0_1 = arith.constant 0 : index
    %c0_2 = arith.constant 0 : index
    %1 = vector.load %arg2[%c0_1, %c0_2] : memref<8x128xbf16, #tpu.memory_space<vmem>>, vector<8x128xbf16>
    %2 = vector.extract_strided_slice %0 {offsets = [0, 0], sizes = [256, 1], strides = [1, 1]} : vector<256x8xbf16> to vector<256x1xbf16>
    %3 = vector.extract_strided_slice %1 {offsets = [0, 0], sizes = [1, 128], strides = [1, 1]} : vector<8x128xbf16> to vector<1x128xbf16>
    %4 = vector.broadcast %2 : vector<256x1xbf16> to vector<256x128xbf16>
    %5 = vector.broadcast %3 : vector<1x128xbf16> to vector<256x128xbf16>
    %6 = arith.mulf %4, %5 : vector<256x128xbf16>
    %7 = vector.extract_strided_slice %0 {offsets = [0, 1], sizes = [256, 1], strides = [1, 1]} : vector<256x8xbf16> to vector<256x1xbf16>
    %8 = vector.extract_strided_slice %1 {offsets = [1, 0], sizes = [1, 128], strides = [1, 1]} : vector<8x128xbf16> to vector<1x128xbf16>
    %9 = vector.broadcast %7 : vector<256x1xbf16> to vector<256x128xbf16>
    %10 = vector.broadcast %8 : vector<1x128xbf16> to vector<256x128xbf16>
    %11 = arith.mulf %9, %10 : vector<256x128xbf16>
    %12 = arith.addf %6, %11 : vector<256x128xbf16>
    %13 = vector.extract_strided_slice %0 {offsets = [0, 2], sizes = [256, 1], strides = [1, 1]} : vector<256x8xbf16> to vector<256x1xbf16>
    %14 = vector.extract_strided_slice %1 {offsets = [2, 0], sizes = [1, 128], strides = [1, 1]} : vector<8x128xbf16> to vector<1x128xbf16>
    %15 = vector.broadcast %13 : vector<256x1xbf16> to vector<256x128xbf16>
    %16 = vector.broadcast %14 : vector<1x128xbf16> to vector<256x128xbf16>
    %17 = arith.mulf %15, %16 : vector<256x128xbf16>
    %18 = arith.addf %12, %17 : vector<256x128xbf16>
    %c0_3 = arith.constant 0 : index
    %c0_4 = arith.constant 0 : index
    %19 = vector.load %arg3[%c0_3, %c0_4] : memref<1x128xbf16, #tpu.memory_space<vmem>>, vector<1x128xbf16>
    %20 = vector.broadcast %19 : vector<1x128xbf16> to vector<256x128xbf16>
    %21 = arith.addf %18, %20 : vector<256x128xbf16>
    %cst = arith.constant 0.000000e+00 : bf16
    %22 = vector.broadcast %cst : bf16 to vector<256x128xbf16>
    %23 = arith.maximumf %21, %22 : vector<256x128xbf16>
    %c0_5 = arith.constant 0 : index
    %c0_6 = arith.constant 0 : index
    %24 = vector.load %arg4[%c0_5, %c0_6] : memref<128x512xbf16, #tpu.memory_space<vmem>>, vector<128x512xbf16>
    %cst_7 = arith.constant dense<0.000000e+00> : vector<256x512xf32>
    %25 = tpu.matmul %23, %24, %cst_7 {dimension_numbers = #tpu.dot_dimension_numbers<[1], [0], [0], [1], [0, 0, 1, 1], [], []>} : vector<256x128xbf16>, vector<128x512xbf16>, vector<256x512xf32> -> vector<256x512xf32>
    %26 = arith.truncf %25 : vector<256x512xf32> to vector<256x512xbf16>
    %c0_8 = arith.constant 0 : index
    %c0_9 = arith.constant 0 : index
    %27 = vector.load %arg5[%c0_8, %c0_9] : memref<1x512xbf16, #tpu.memory_space<vmem>>, vector<1x512xbf16>
    %28 = vector.broadcast %27 : vector<1x512xbf16> to vector<256x512xbf16>
    %29 = arith.addf %26, %28 : vector<256x512xbf16>
    %cst_10 = arith.constant 0.000000e+00 : bf16
    %30 = vector.broadcast %cst_10 : bf16 to vector<256x512xbf16>
    %31 = arith.maximumf %29, %30 : vector<256x512xbf16>
    %c0_11 = arith.constant 0 : index
    %c0_12 = arith.constant 0 : index
    %32 = vector.load %arg6[%c0_11, %c0_12] : memref<512x128xbf16, #tpu.memory_space<vmem>>, vector<512x128xbf16>
    %cst_13 = arith.constant dense<0.000000e+00> : vector<256x128xf32>
    %33 = tpu.matmul %31, %32, %cst_13 {dimension_numbers = #tpu.dot_dimension_numbers<[1], [0], [0], [1], [0, 0, 1, 1], [], []>} : vector<256x512xbf16>, vector<512x128xbf16>, vector<256x128xf32> -> vector<256x128xf32>
    %34 = arith.truncf %33 : vector<256x128xf32> to vector<256x128xbf16>
    %c0_14 = arith.constant 0 : index
    %c0_15 = arith.constant 0 : index
    %35 = vector.load %arg7[%c0_14, %c0_15] : memref<1x128xbf16, #tpu.memory_space<vmem>>, vector<1x128xbf16>
    %36 = vector.broadcast %35 : vector<1x128xbf16> to vector<256x128xbf16>
    %37 = arith.addf %34, %36 : vector<256x128xbf16>
    %cst_16 = arith.constant 0.000000e+00 : bf16
    %38 = vector.broadcast %cst_16 : bf16 to vector<256x128xbf16>
    %39 = arith.maximumf %37, %38 : vector<256x128xbf16>
    %c0_17 = arith.constant 0 : index
    %c0_18 = arith.constant 0 : index
    %40 = vector.load %arg8[%c0_17, %c0_18] : memref<128x128xbf16, #tpu.memory_space<vmem>>, vector<128x128xbf16>
    %cst_19 = arith.constant dense<0.000000e+00> : vector<256x128xf32>
    %41 = tpu.matmul %39, %40, %cst_19 {dimension_numbers = #tpu.dot_dimension_numbers<[1], [0], [0], [1], [0, 0, 1, 1], [], []>} : vector<256x128xbf16>, vector<128x128xbf16>, vector<256x128xf32> -> vector<256x128xf32>
    %42 = arith.truncf %41 : vector<256x128xf32> to vector<256x128xbf16>
    %c0_20 = arith.constant 0 : index
    %c0_21 = arith.constant 0 : index
    %43 = vector.load %arg9[%c0_20, %c0_21] : memref<1x128xbf16, #tpu.memory_space<vmem>>, vector<1x128xbf16>
    %44 = vector.broadcast %43 : vector<1x128xbf16> to vector<256x128xbf16>
    %45 = arith.addf %42, %44 : vector<256x128xbf16>
    %c0_22 = arith.constant 0 : index
    %c0_23 = arith.constant 0 : index
    %46 = vector.load %arg10[%c0_22, %c0_23] : memref<256x128xbf16, #tpu.memory_space<vmem>>, vector<256x128xbf16>
    tpu.vector_store %arg10[%c0_22, %c0_23], %45 {strides = array<i32>} : memref<256x128xbf16, #tpu.memory_space<vmem>>, vector<256x128xbf16>,
    return
  }
  func.func @transform_0(%arg0: i32) -> (i32, i32) {
    %c0_i32 = arith.constant 0 : i32
    %c0_i32_0 = arith.constant 0 : i32
    return %arg0, %c0_i32 : i32, i32
  }
  func.func @transform_1(%arg0: i32) -> (i32, i32) {
    %c0_i32 = arith.constant 0 : i32
    %c0_i32_0 = arith.constant 0 : i32
    %c0_i32_1 = arith.constant 0 : i32
    return %c0_i32, %c0_i32_0 : i32, i32
  }
  func.func @transform_2(%arg0: i32) -> (i32, i32) {
    %c0_i32 = arith.constant 0 : i32
    %c0_i32_0 = arith.constant 0 : i32
    %c0_i32_1 = arith.constant 0 : i32
    return %c0_i32, %c0_i32_0 : i32, i32
  }
  func.func @transform_3(%arg0: i32) -> (i32, i32) {
    %c0_i32 = arith.constant 0 : i32
    %c0_i32_0 = arith.constant 0 : i32
    %c0_i32_1 = arith.constant 0 : i32
    return %c0_i32, %c0_i32_0 : i32, i32
  }
  func.func @transform_4(%arg0: i32) -> (i32, i32) {
    %c0_i32 = arith.constant 0 : i32
    %c0_i32_0 = arith.constant 0 : i32
    %c0_i32_1 = arith.constant 0 : i32
    return %c0_i32, %c0_i32_0 : i32, i32
  }
  func.func @transform_5(%arg0: i32) -> (i32, i32) {
    %c0_i32 = arith.constant 0 : i32
    %c0_i32_0 = arith.constant 0 : i32
    %c0_i32_1 = arith.constant 0 : i32
    return %c0_i32, %c0_i32_0 : i32, i32
  }
  func.func @transform_6(%arg0: i32) -> (i32, i32) {
    %c0_i32 = arith.constant 0 : i32
    %c0_i32_0 = arith.constant 0 : i32
    %c0_i32_1 = arith.constant 0 : i32
    return %c0_i32, %c0_i32_0 : i32, i32
  }
  func.func @transform_7(%arg0: i32) -> (i32, i32) {
    %c0_i32 = arith.constant 0 : i32
    %c0_i32_0 = arith.constant 0 : i32
    %c0_i32_1 = arith.constant 0 : i32
    return %c0_i32, %c0_i32_0 : i32, i32
  }
  func.func @transform_8(%arg0: i32) -> (i32, i32) {
    %c0_i32 = arith.constant 0 : i32
    %c0_i32_0 = arith.constant 0 : i32
    %c0_i32_1 = arith.constant 0 : i32
    return %c0_i32, %c0_i32_0 : i32, i32
  }
  func.func @transform_9(%arg0: i32) -> (i32, i32) {
    %c0_i32 = arith.constant 0 : i32
    %c0_i32_0 = arith.constant 0 : i32
    return %arg0, %c0_i32 : i32, i32
  }
}

</mosaic_0001>

<bundles_post_ra>
// kernel: tpu_custom_call.1
= control target key start
LH: loop header
LB: loop body
LE: loop exit
PB: predicated region body
PF: predicated region fallthrough
CT: control target
= control target key end

     0   :  { %14 = vsyncpa [#allocation3], 0  ;;  %s5807_s0 = inlined_call_operand.vmem [shape: bf16[1024,8], index: 0, kind: input, shape index: {}]   ;;  %s5808_s1 = inlined_call_operand.vmem [shape: bf16[8,128], index: 1, kind: input, shape index: {}]   ;;  %s5809_s2 = inlined_call_operand.vmem [shape: bf16[1,128], index: 2, kind: input, shape index: {}]   ;;  %s5810_s3 = inlined_call_operand.vmem [shape: bf16[128,512], index: 3, kind: input, shape index: {}]   ;;  %s5811_s4 = inlined_call_operand.vmem [shape: bf16[1,512], index: 4, kind: input, shape index: {}]   ;;  %s5812_s5 = inlined_call_operand.vmem [shape: bf16[512,128], index: 5, kind: input, shape index: {}]   ;;  %s5813_s6 = inlined_call_operand.vmem [shape: bf16[1,128], index: 6, kind: input, shape index: {}]   ;;  %s5814_s7 = inlined_call_operand.hbm [shape: bf16[128,128], index: 7, kind: input, shape index: {}]   ;;  %s5815_s8 = inlined_call_operand.vmem [shape: bf16[1,128], index: 8, kind: input, shape index: {}]   ;;  %s5816_s9 = inlined_call_operand.hbm [shape: bf16[1024,128], index: 9, kind: output, shape index: {}]  }
   0x1   :  { %15 = vsyncpa [#allocation4], 0 }
   0x2   :  { %17 = vsyncpa [#allocation4 + $0x1], 0  ;;  %s4598_s30 = smov 0   ;;  %s4600_s10 = smov 0  }
   0x3   :  { %s4602_s11 = smov 0   ;;  %s4604_s12 = smov 0  }
   0x4 LB: > { %s4619_s13 = sadd.s32 4294967295, %s4535_s12   ;;  %s3788_s14 = sadd.s32 4294967294, %s4535_s12   ;;  %s4535_s12 = sphi %s4604_s12, %s5832_s12   ;;  %s4531_s11 = sphi %s4602_s11, %s5831_s11   ;;  %s4527_s10 = sphi %s4600_s10, %s5830_s10   ;;  %s4523_s30 = sphi %s4598_s30, %s5829_s30  }
   0x5   : > { %s4623_s15 = sadd.s32 1, %s4535_s12   ;;  %s224_s16 = sadd.s32 1, %s4531_s11 }
   0x6   : > { %s221_s17 = ssub.s32 %s4535_s12, %s4623_s15  ;;  %p234_p0 = scmp.ne.s32.totalorder %s4531_s11, %s4527_s10 }
   0x7   : > { %p222_p1 = scmp.eq.s32.totalorder %s221_s17, 0  ;;  %p235_p2 = scmp.eq.s32.totalorder %s4619_s13, 3 }
   0x8   : > { %p240_p3 = scmp.ne.s32.totalorder %s4527_s10, %s4523_s30  ;;  %p241_p4 = scmp.eq.s32.totalorder %s3788_s14, 3 }
   0x9   : > { %s4634_s18 = scalar_select %p222_p1, %s4531_s11, %s224_s16  }
   0xa   : > { %p4636_p5 = por %p235_p2, %p234_p0  ;;  %p4640_p6 = por %p241_p4, %p240_p3 }
   0xb   : > { %p3789_p7 = scmp.ge.s32.totalorder %s4535_s12, 1  ;;  %p248_p8 = scmp.lt.s32.totalorder %s4535_s12, 5 }
   0xc   : > { %s5820_s19 = scalar_select %p4636_p5, 1, 0 }
   0xd   : > { %s5821_s20 = scalar_select %p4640_p6, 1, 0 }
   0xe   : > { %p5817_p9 = scmp.eq.s32.totalorder %s4619_s13, 0  ;;  %p4647_p10 = pnand %p3789_p7, %p248_p8 }
   0xf   : > { %s4537_s22 = smov [#allocation2]   ;;  %s4441_s27 = scalar_lea.hbm %s5814_s7, 1024 }
  0x10   : > { %s5822_s21 = scalar_select %p4647_p10, 1, 0 }
  0x11   : > { %s278_s23 = sshll.u32 %s4537_s22, 4  ;;  %p4246_p11 = pneg %p4647_p10  ;;  %s279_s23 = int_to_ptr.vmem [resolvable:$true] %s278_s23 }
  0x12   : > { %p4442_p13 = scmp.ne.s32.totalorder %s5814_s7, %s4441_s27  ;;  %p4448_p3 = scmp.lt.u32.totalorder %s4441_s27, %s5814_s7 }
  0x13   : > { %p4655_p12 = pnand %p5817_p9, %p4246_p11 }
  0x15   : > { %p4443_p0 = pneg %p4655_p12 }
  0x17   : > { %p4444_p1 = pnand %p4443_p0, %p4442_p13 }
  0x19   : > { %p4445_p2 = pneg %p4444_p1 }
  0x1b   : > { %p4450_p4 = pnand %p4448_p3, %p4445_p2 }
  0x1d   : > { %4453 = shalt.err (!%p4450_p4)
}
  0x1e   : > { %s4454_s17 = scalar_lea.vmem %s279_s23, 1024  ;;  %p4462_p9 = scmp.lt.s32.totalorder %s279_s23, %s279_s23 }
  0x1f   : > { %p4455_p7 = scmp.ne.s32.totalorder %s279_s23, %s4454_s17  ;;  %p4463_p6 = scmp.lt.s32.totalorder %s4454_s17, %s4454_s17 }
  0x21   : > { %p4457_p8 = pnand %p4455_p7, %p4443_p0  ;;  %p4464_p5 = por %p4463_p6, %p4462_p9 }
  0x23   : > { %p4458_p11 = pneg %p4457_p8 }
  0x25   : > { %p4465_p10 = pnand %p4464_p5, %p4458_p11 }
  0x27   : > { %4468 = shalt.err (!%p4465_p10)
}
  0x28   : > { %s4538_s22 = smov 64   ;;  %s4539_s25 = smov 4  }
  0x29   : > { %4249 = dma.hbm_to_vmem [thread:$0]  (!%p4655_p12), %s5814_s7, 1024, %s279_s23, [#allocation3], %s4538_s22, %s4538_s22, %s4539_s25  }
  0x2a   : > { %p5824_p13 = scmp.ne.s32.totalorder %s5822_s21, 0 }
  0x2b   : > { %p5825_p1 = scmp.eq.s32.totalorder (!%p5824_p13), %s4619_s13, 0 }
  0x2c   : > { %306 = sbr.rel (%p5824_p13) target bundleno = 1208 (0x4b8), region = 56 }
  0x33   : > { %4514 = dma.done.wait (%p5825_p1), [#allocation3], 1024   ;;  %p5826_p0 = pmov %p5825_p1 }
  0x34   : > { %s3795_s27 = sshll.u32 %s4619_s13, 5  ;;  %v4540_v0 = vmov 2   ;;  %v4541_v1 = vmov 1   ;;  %v4542_v2 = vmov 0   ;;  %v4353_v6 = vld [vmem:[%s5810_s3 + $0x4] ss:$16 sps:$4 sm:$0xff]   ;;  %v391_v48 = vlaneseq }
  0x35   : > { %4516 = vsyncadd (%p5826_p0), [#allocation3], 4294966272  ;;  %4300 = vset.pattern.permute.xlu0 %v4540_v0  ;;  %4299 = vset.pattern.permute.xlu1 %v4541_v1  ;;  %p343_p5 = scmp.lt.s32.totalorder %s3795_s27, 127  ;;  %v4355_v8 = vld [vmem:[%s5810_s3] ss:$16 sps:$4 sm:$0xff]   ;;  %s339_s23 = sand.u32 1, %s4527_s10  }
  0x36   : > { %2177 = vmatprep.mubr.bf16.mxu1 %v4542_v2  ;;  %2057 = vmatprep.mubr.bf16.mxu0 %v4542_v2  ;;  %v4356_v9 = vld [vmem:[%s5810_s3 + $0x24] ss:$16 sps:$4 sm:$0xff]   ;;  %v4358_v10 = vld [vmem:[%s5810_s3 + $0x20] ss:$16 sps:$4 sm:$0xff]   ;;  %v4379_v34 = vld [vmem:[%s5810_s3 + $0xc] ss:$16 sps:$4 sm:$0xff]  }
  0x37   : > { %s5834_s27 = smov (!%p343_p5, %s3795_s27), 127  ;;  %4224 = vmatprep.subr.bf16.mxu1 %v4353_v6  ;;  %2025 = vmatprep.subr.bf16.mxu0 %v4353_v6  ;;  %v4359_v11 = vld [vmem:[%s5810_s3 + $0x44] ss:$16 sps:$4 sm:$0xff]   ;;  %v4361_v12 = vld [vmem:[%s5810_s3 + $0x40] ss:$16 sps:$4 sm:$0xff]   ;;  %v4853_v52 = vshrl.u32 %v391_v48, 7 }
  0x38   : > { %s3796_s21 = sshll.u32 %s5834_s27, 2  ;;  %4232 = vmatpush1.bf16.msra.mxu1 %v4355_v8  ;;  %2026 = vmatpush1.bf16.msra.mxu0 %v4355_v8  ;;  %v4362_v13 = vld [vmem:[%s5810_s3 + $0x64] ss:$16 sps:$4 sm:$0xff]   ;;  %v4364_v14 = vld [vmem:[%s5810_s3 + $0x60] ss:$16 sps:$4 sm:$0xff]   ;;  %s3794_s24 = sshll.u32 %s339_s23, 7 }
  0x39   : > { %s4689_s29 = scalar_lea.vmem %s5807_s0, %s3796_s21  ;;  %4225 = vmatprep.subr.bf16.mxu1 %v4356_v9  ;;  %2027 = vmatprep.subr.bf16.mxu0 %v4356_v9  ;;  %v4365_v15 = vld [vmem:[%s5810_s3 + $0x84] ss:$16 sps:$4 sm:$0xff]   ;;  %v4367_v17 = vld [vmem:[%s5810_s3 + $0x80] ss:$16 sps:$4 sm:$0xff]   ;;  %v4543_v50 = vmov 839922192  }
  0x3a   : > { %v374_v3 = vld [vmem:[%s4689_s29 + $0x60] sm:$0xf]  ;;  %v376_v4 = vld [vmem:[%s4689_s29 + $0x68] sm:$0xf]  ;;  %v375_v5 = vld [vmem:[%s4689_s29 + $0x64] sm:$0xf]  ;;  %v389_v51 = vunpack.c.l.s4 %v4543_v50 }
  0x3b   : > { %1502 = vperm.xlu0 %4300, %v374_v3   ;;  %1075 = vperm.xlu1 %4299, %v374_v3   ;;  %v4698_v7 = vld [vmem:[%s4689_s29 + $0x70] sm:$0xf]  ;;  %v377_v16 = vld [vmem:[%s4689_s29 + $0x6c] sm:$0xf]  ;;  %v4368_v18 = vld [vmem:[%s5810_s3 + $0xa4] ss:$16 sps:$4 sm:$0xff]  }
  0x3c   : > { %4233 = vmatpush1.bf16.msra.mxu1 %v4358_v10  ;;  %2028 = vmatpush1.bf16.msra.mxu0 %v4358_v10  ;;  %v379_v19 = vld [vmem:[%s4689_s29 + $0x74] sm:$0xf]  ;;  %v4370_v20 = vld [vmem:[%s5810_s3 + $0xa0] ss:$16 sps:$4 sm:$0xff]   ;;  %v381_v22 = vld [vmem:[%s4689_s29 + $0x7c] sm:$0xf]  ;;  %v390_v56 = vunpack.c.0.s8 %v389_v51 }
  0x3d   : > { %4226 = vmatprep.subr.bf16.mxu1 %v4359_v11  ;;  %2029 = vmatprep.subr.bf16.mxu0 %v4359_v11  ;;  %v4371_v21 = vld [vmem:[%s5810_s3 + $0xc4] ss:$16 sps:$4 sm:$0xff]   ;;  %v4373_v23 = vld [vmem:[%s5810_s3 + $0xc0] ss:$16 sps:$4 sm:$0xff]   ;;  %v4757_v27 = vld [vmem:[%s4689_s29 + $0xc] sm:$0xf] }
  0x3e   : > { %v4374_v24 = vld [vmem:[%s5810_s3 + $0xe4] ss:$16 sps:$4 sm:$0xff]   ;;  %v4376_v26 = vld [vmem:[%s5810_s3 + $0xe0] ss:$16 sps:$4 sm:$0xff]   ;;  %v4767_v29 = vld [vmem:[%s4689_s29 + $0x1c] sm:$0xf] }
  0x3f   : > { %1524 = vperm.xlu0 %4300, %v376_v4   ;;  %1086 = vperm.xlu1 %4299, %v375_v5   ;;  %v351_v25 = vld [vmem:[%s4689_s29 + $0x4] sm:$0xf]  ;;  %v4761_v28 = vld [vmem:[%s4689_s29 + $0x14] sm:$0xf]  ;;  %v380_v30 = vld [vmem:[%s4689_s29 + $0x78] sm:$0xf] }
  0x40   : > { %4234 = vmatpush1.bf16.msra.mxu1 %v4361_v12  ;;  %2030 = vmatpush1.bf16.msra.mxu0 %v4361_v12  ;;  %v350_v31 = vld [vmem:[%s4689_s29] sm:$0xf]  ;;  %v352_v32 = vld [vmem:[%s4689_s29 + $0x8] sm:$0xf]  ;;  %v354_v33 = vld [vmem:[%s4689_s29 + $0x10] sm:$0xf] }
  0x41   : > { %4227 = vmatprep.subr.bf16.mxu1 %v4362_v13  ;;  %2031 = vmatprep.subr.bf16.mxu0 %v4362_v13  ;;  %v4784_v35 = vld [vmem:[%s4689_s29 + $0x18] sm:$0xf]  ;;  %v4788_v36 = vld [vmem:[%s4689_s29 + $0x20] sm:$0xf]  ;;  %v4793_v37 = vld [vmem:[%s4689_s29 + $0x28] sm:$0xf] }
  0x42   : > { %v4798_v38 = vld [vmem:[%s4689_s29 + $0x30] sm:$0xf]  ;;  %v4802_v39 = vld [vmem:[%s4689_s29 + $0x24] sm:$0xf]  ;;  %v4808_v40 = vld [vmem:[%s4689_s29 + $0x2c] sm:$0xf] }
  0x43   : > { %1546 = vperm.xlu0 %4300, %v4698_v7   ;;  %4301 = vset.pattern.permute.xlu1 %v4540_v0  ;;  %v4812_v41 = vld [vmem:[%s4689_s29 + $0x34] sm:$0xf]  ;;  %v4817_v42 = vld [vmem:[%s4689_s29 + $0x3c] sm:$0xf]  ;;  %v4822_v43 = vld [vmem:[%s4689_s29 + $0x44] sm:$0xf] }
  0x44   : > { %1513 = vperm.xlu1 %4301, %v375_v5   ;;  %4235 = vmatpush1.bf16.msra.mxu1 %v4364_v14  ;;  %v4827_v44 = vld [vmem:[%s4689_s29 + $0x4c] sm:$0xf]  ;;  %v4833_v45 = vld [vmem:[%s4689_s29 + $0x38] sm:$0xf]  ;;  %v4839_v46 = vld [vmem:[%s4689_s29 + $0x40] sm:$0xf] }
  0x45   : > { %4228 = vmatprep.subr.bf16.mxu1 %v4365_v15  ;;  %2032 = vmatpush1.bf16.msra.mxu0 %v4364_v14  ;;  %v4844_v47 = vld [vmem:[%s4689_s29 + $0x48] sm:$0xf]  ;;  %v382_v49 = vld [vmem:[%s5808_s1] sm:$0xf]  ;;  %v4858_v57 = vsub.s32 0, %v4853_v52  ;;  %v1591_v62 = vsub.s32 1, %v4853_v52 }
  0x46   : > { %2033 = vmatprep.subr.bf16.mxu0 %v4365_v15  ;;  %v1162_v53 = vshrl.u32 %v382_v49, 16  ;;  %v768_v61 = vpack.i.b16 %v382_v49, %v382_v49  ;;  %v4864_v63 = vld [vmem:[%s4689_s29 + $0x50] sm:$0xf]  ;;  %s5707_s14 = scalar_lea.vmem [#allocation5], %s3794_s24  ;;  %s3927_s16 = sshll.u32 %s4619_s13, 11 }
  0x47   : > { %4307 = vset.pattern.permute.xlu0 %v4542_v2  ;;  %s5756_s25 = scalar_lea.hbm %s5816_s9, %s3927_s16  ;;  %s5766_s13 = scalar_lea.sflag [#allocation4], %s339_s23 }
  0x48   : > { %673 = vperm.xlu0 %4307, %v374_v3   ;;  %4302 = vset.pattern.permute.xlu1 %v4542_v2  ;;  %v1163_v58 = vpack.i.b16 %v1162_v53, %v1162_v53  ;;  %v4868_v3 = vsub.s32 %v390_v56, %v4853_v52  ;;  %v773_v6 = vrot.slane %v768_v61, %v4858_v57  ;;  %p5827_p9 = scmp.ne.s32.totalorder %s5820_s19, 0  ;;  %s4545_s28 = smov [#allocation5]  }
  0x49   : > { %697 = vperm.xlu1 %4302, %v376_v4   ;;  %4236 = vmatpush1.bf16.msra.mxu1 %v4367_v17  ;;  %v1592_v9 = vrot.slane %v768_v61, %v1591_v62  ;;  %s4473_s27 = sshll.u32 %s4545_s28, 4  ;;  %s4474_s27 = int_to_ptr.vmem [resolvable:$false] %s4473_s27 }
  0x4a   : > { %4229 = vmatprep.subr.bf16.mxu1 %v4368_v18  ;;  %2034 = vmatpush1.bf16.msra.mxu0 %v4367_v17  ;;  %v4883_v14 = vcombine.low %v773_v6, %v773_v6  ;;  %s4475_s21 = scalar_lea.vmem %s4474_s27, 4096 }
  0x4b   : > { %2035 = vmatprep.subr.bf16.mxu0 %v4368_v18 }
  0x4c   : > { %685 = vperm.xlu0 %4307, %v375_v5  }
  0x4d   : > { %4303 = vset.pattern.permute.xlu1 %v4541_v1  ;;  %4237 = vmatpush1.bf16.msra.mxu1 %v4370_v20 }
  0x4e   : > { %1097 = vperm.xlu1 %4303, %v376_v4   ;;  %4230 = vmatprep.subr.bf16.mxu1 %v4371_v21  ;;  %v1168_v4 = vrot.slane %v1163_v58, %v4858_v57 }
  0x4f   : > { %2036 = vmatpush1.bf16.msra.mxu0 %v4370_v20  ;;  %v4892_v20 = vld [vmem:[%s4689_s29 + $0x54] sm:$0xf] }
  0x50   : > { %709 = vperm.xlu0 %4307, %v377_v16   ;;  %2037 = vmatprep.subr.bf16.mxu0 %v4371_v21  ;;  %v4879_v11 = vcombine.low %v1168_v4, %v1168_v4 }
  0x51   : > { %4238 = vmatpush1.bf16.msra.mxu1 %v4373_v23 }
  0x52   : > { %1108 = vperm.xlu1 %4303, %v377_v16   ;;  %4231 = vmatprep.subr.bf16.mxu1 %v4374_v24 }
  0x53   : > { %2038 = vmatpush1.bf16.msra.mxu0 %v4373_v23 }
  0x54   : > { %733 = vperm.xlu0 %4307, %v379_v19   ;;  %2039 = vmatprep.subr.bf16.mxu0 %v4374_v24 }
  0x55   : > { %4239 = vmatpush1.bf16.msra.mxu1 %v4376_v26 }
  0x56   : > { %4304 = vset.pattern.permute.xlu1 %v4540_v0  ;;  %2218 = vmatprep.subr.bf16.mxu1 %v4379_v34 }
  0x57   : > { %1535 = vperm.xlu1 %4304, %v377_v16   ;;  %2040 = vmatpush1.bf16.msra.mxu0 %v4376_v26  ;;  %v4885_v16 = vcombine.low %v1592_v9, %v1592_v9  ;;  %v4925_v9 = vld [vmem:[%s4689_s29 + $0x5c] sm:$0xf] }
  0x58   : > { %757 = vperm.xlu0 %4307, %v381_v22  }
  0x5b   : > { %4305 = vset.pattern.permute.xlu1 %v4542_v2 }
  0x5c   : > { %721 = vperm.xlu1 %4305, %v4698_v7   ;;  %397 = vperm.xlu0 %4307, %v351_v25  }
  0x60   : > { %4306 = vset.pattern.permute.xlu1 %v4541_v1  ;;  %421 = vperm.xlu0 %4307, %v4757_v27  }
  0x61   : > { %1119 = vperm.xlu1 %4306, %v4698_v7   ;;  %v1661_v7 = vld [vmem:[%s5809_s2] sm:$0x1] }
  0x62   : > { %v1663_v10 = vpack.i.b16 %v1661_v7, %v1661_v7 }
  0x64   : > { %445 = vperm.xlu0 %4307, %v4761_v28  }
  0x65   : > { %1130 = vperm.xlu1 %4306, %v379_v19  }
  0x68   : > { %469 = vperm.xlu0 %4307, %v4767_v29  }
  0x69   : > { %4308 = vset.pattern.permute.xlu1 %v4540_v0 }
  0x6a   : > { %1557 = vperm.xlu1 %4308, %v379_v19   ;;  %v1668_v19 = vrot.slane %v1663_v10, %v4858_v57 }
  0x6c   : > { %4322 = vset.pattern.permute.xlu0 %v4540_v0 }
  0x6d   : > { %1568 = vperm.xlu0 %4322, %v380_v30  }
  0x6e   : > { %4309 = vset.pattern.permute.xlu1 %v4542_v2 }
  0x6f   : > { %745 = vperm.xlu1 %4309, %v380_v30  }
  0x71   : > { %1238 = vperm.xlu0 %4322, %v350_v31  }
  0x73   : > { %4310 = vset.pattern.permute.xlu1 %v4541_v1 }
  0x74   : > { %1141 = vperm.xlu1 %4310, %v380_v30  }
  0x75   : > { %1260 = vperm.xlu0 %4322, %v352_v32  }
  0x78   : > { %1152 = vperm.xlu1 %4310, %v381_v22  }
  0x79   : > { %1282 = vperm.xlu0 %4322, %v354_v33  }
  0x7c   : > { %4311 = vset.pattern.permute.xlu1 %v4540_v0 }
  0x7d   : > { %1579 = vperm.xlu1 %4311, %v381_v22   ;;  %1304 = vperm.xlu0 %4322, %v4784_v35  }
  0x81   : > { %4312 = vset.pattern.permute.xlu1 %v4542_v2  ;;  %1326 = vperm.xlu0 %4322, %v4788_v36  }
  0x82   : > { %385 = vperm.xlu1 %4312, %v350_v31  }
  0x85   : > { %1348 = vperm.xlu0 %4322, %v4793_v37  }
  0x86   : > { %4313 = vset.pattern.permute.xlu1 %v4541_v1 }
  0x87   : > { %811 = vperm.xlu1 %4313, %v350_v31   ;;  %v4903_v31 = vcombine.low %v1668_v19, %v1668_v19  ;;  %v4377_v19 = vld [vmem:[%s5810_s3 + $0x8] ss:$16 sps:$4 sm:$0xff]  }
  0x89   : > { %1370 = vperm.xlu0 %4322, %v4798_v38  }
  0x8b   : > { %822 = vperm.xlu1 %4313, %v351_v25  }
  0x8d   : > { %4333 = vset.pattern.permute.xlu0 %v4542_v2 }
  0x8e   : > { %493 = vperm.xlu0 %4333, %v4802_v39  }
  0x8f   : > { %4314 = vset.pattern.permute.xlu1 %v4540_v0 }
  0x90   : > { %1249 = vperm.xlu1 %4314, %v351_v25  }
  0x92   : > { %517 = vperm.xlu0 %4333, %v4808_v40  }
  0x94   : > { %4315 = vset.pattern.permute.xlu1 %v4542_v2 }
  0x95   : > { %409 = vperm.xlu1 %4315, %v352_v32  }
  0x96   : > { %541 = vperm.xlu0 %4333, %v4812_v41  }
  0x99   : > { %4316 = vset.pattern.permute.xlu1 %v4541_v1 }
  0x9a   : > { %833 = vperm.xlu1 %4316, %v352_v32   ;;  %565 = vperm.xlu0 %4333, %v4817_v42  }
  0x9e   : > { %844 = vperm.xlu1 %4316, %v4757_v27   ;;  %589 = vperm.xlu0 %4333, %v4822_v43  }
  0xa2   : > { %4317 = vset.pattern.permute.xlu1 %v4540_v0  ;;  %613 = vperm.xlu0 %4333, %v4827_v44  }
  0xa3   : > { %1271 = vperm.xlu1 %4317, %v4757_v27  }
  0xa6   : > { %4342 = vset.pattern.permute.xlu0 %v4540_v0 }
  0xa7   : > { %4318 = vset.pattern.permute.xlu1 %v4542_v2  ;;  %1392 = vperm.xlu0 %4342, %v4833_v45  }
  0xa8   : > { %433 = vperm.xlu1 %4318, %v354_v33  }
  0xab   : > { %1414 = vperm.xlu0 %4342, %v4839_v46  }
  0xac   : > { %4319 = vset.pattern.permute.xlu1 %v4541_v1 }
  0xad   : > { %855 = vperm.xlu1 %4319, %v354_v33  }
  0xaf   : > { %1436 = vperm.xlu0 %4342, %v4844_v47  }
  0xb1   : > { %866 = vperm.xlu1 %4319, %v4761_v28  }
  0xb3   : > { %1458 = vperm.xlu0 %4342, %v4864_v63  }
  0xb5   : > { %4320 = vset.pattern.permute.xlu1 %v4540_v0 }
  0xb6   : > { %1293 = vperm.xlu1 %4320, %v4761_v28  }
  0xb7   : > { %4347 = vset.pattern.permute.xlu0 %v4542_v2 }
  0xb8   : > { %637 = vperm.xlu0 %4347, %v4892_v20  }
  0xba   : > { %v1076_v54 = vpop.permute.xlu1 %1075  ;;  %4321 = vset.pattern.permute.xlu1 %v4542_v2  ;;  %v1503_v55 = vpop.permute.xlu0 %1502 }
  0xbb   : > { %457 = vperm.xlu1 %4321, %v4784_v35   ;;  %v1084_v12 = vrot.slane %v1076_v54, %v4868_v3  ;;  %v1511_v13 = vrot.slane %v1503_v55, %v4868_v3 }
  0xbc   : > { %661 = vperm.xlu0 %4347, %v4925_v9  }
  0xbd   : > { %v1197_v21 = vmul.bf16 %v4879_v11, %v1084_v12  ;;  %v1621_v22 = vmul.bf16 %v4885_v16, %v1511_v13 }
  0xbe   : > { %v1087_v59 = vpop.permute.xlu1 %1086  ;;  %v1525_v60 = vpop.permute.xlu0 %1524 }
  0xbf   : > { %4323 = vset.pattern.permute.xlu1 %v4541_v1  ;;  %v1095_v23 = vrot.slane %v1087_v59, %v4868_v3  ;;  %v1533_v48 = vrot.slane %v1525_v60, %v4868_v3 }
  0xc0   : > { %877 = vperm.xlu1 %4323, %v4784_v35   ;;  %4351 = vset.pattern.permute.xlu0 %v4540_v0 }
  0xc1   : > { %v1198_v32 = vmul.bf16 %v4879_v11, %v1095_v23  ;;  %v1623_v60 = vmul.bf16 %v4885_v16, %v1533_v48  ;;  %v4382_v23 = vld [vmem:[%s5810_s3 + $0x2c] ss:$16 sps:$4 sm:$0xff]  }
  0xc2   : > { %v4871_v5 = vpop.permute.xlu0 %1546 }
  0xc3   : > { %v1514_v8 = vpop.permute.xlu1 %1513 }
  0xc4   : > { %888 = vperm.xlu1 %4323, %v4767_v29   ;;  %v1522_v26 = vrot.slane %v1514_v8, %v4868_v3 }
  0xc6   : > { %v1622_v50 = vmul.bf16 %v4885_v16, %v1522_v26 }
  0xc7   : > { %v674_v15 = vpop.permute.xlu0 %673 }
  0xc8   : > { %v682_v17 = vrot.slane %v674_v15, %v4868_v3  ;;  %v698_v18 = vpop.permute.xlu1 %697  ;;  %4324 = vset.pattern.permute.xlu1 %v4540_v0 }
  0xc9   : > { %1315 = vperm.xlu1 %4324, %v4767_v29   ;;  %v706_v29 = vrot.slane %v698_v18, %v4868_v3 }
  0xca   : > { %v802_v24 = vmul.bf16 %v4883_v14, %v682_v17 }
  0xcb   : > { %v686_v25 = vpop.permute.xlu0 %685  ;;  %v804_v54 = vmul.bf16 %v4883_v14, %v706_v29  ;;  %v4955_v29 = vld [vmem:[%s4689_s29 + $0x58] sm:$0xf]  ;;  %s3714_s29 = sshll.u32 %s5707_s14, 4  ;;  %s5758_s29 = int_to_ptr.vmem [resolvable:$true] %s3714_s29 }
  0xcc   : > { %v1229_v27 = vadd.bf16 %v1197_v21, %v802_v24  ;;  %v694_v28 = vrot.slane %v686_v25, %v4868_v3  ;;  %1480 = vperm.xlu0 %4351, %v4955_v29   ;;  %s4469_s26 = scalar_lea.vmem %s5758_s29, 2048  ;;  %p4476_p2 = scmp.lt.s32.totalorder %s5758_s29, %s4474_s27 }
  0xcd   : > { %v1098_v30 = vpop.permute.xlu1 %1097  ;;  %4325 = vset.pattern.permute.xlu1 %v4542_v2  ;;  %p4470_p6 = scmp.ne.s32.totalorder %s5758_s29, %s4469_s26  ;;  %p4477_p3 = scmp.lt.s32.totalorder %s4475_s21, %s4469_s26 }
  0xce   : > { %v1653_v33 = vadd.bf16 %v1621_v22, %v1229_v27  ;;  %v803_v34 = vmul.bf16 %v4883_v14, %v694_v28  ;;  %v1106_v35 = vrot.slane %v1098_v30, %v4868_v3  ;;  %481 = vperm.xlu1 %4325, %v4788_v36   ;;  %v4380_v28 = vld [vmem:[%s5810_s3 + $0x28] ss:$16 sps:$4 sm:$0xff]  }
  0xcf   : > { %v710_v49 = vpop.permute.xlu0 %709  ;;  %p4471_p10 = pnand %p4470_p6, %p5827_p9  ;;  %p4478_p4 = por %p4477_p3, %p4476_p2 }
  0xd0   : > { %v1230_v51 = vadd.bf16 %v1198_v32, %v803_v34  ;;  %v1199_v53 = vmul.bf16 %v4879_v11, %v1106_v35  ;;  %v718_v55 = vrot.slane %v710_v49, %v4868_v3  ;;  %v1697_v61 = vadd.bf16 %v4903_v31, %v1653_v33  ;;  %v4385_v32 = vld [vmem:[%s5810_s3 + $0x4c] ss:$16 sps:$4 sm:$0xff]   ;;  %v4383_v49 = vld [vmem:[%s5810_s3 + $0x48] ss:$16 sps:$4 sm:$0xff]  }
  0xd1   : > { %v1109_v56 = vpop.permute.xlu1 %1108  ;;  %p4472_p12 = pneg %p4471_p10 }
  0xd2   : > { %v1654_v58 = vadd.bf16 %v1622_v50, %v1230_v51  ;;  %v1117_v59 = vrot.slane %v1109_v56, %v4868_v3  ;;  %4326 = vset.pattern.permute.xlu1 %v4541_v1  ;;  %v1231_v62 = vadd.bf16 %v1199_v53, %v804_v54  ;;  %v805_v7 = vmul.bf16 %v4883_v14, %v718_v55  ;;  %v4388_v53 = vld [vmem:[%s5810_s3 + $0x6c] ss:$16 sps:$4 sm:$0xff]  }
  0xd3   : > { %899 = vperm.xlu1 %4326, %v4788_v36   ;;  %v4919_v4 = vpop.permute.xlu0 %733  ;;  %v1729_v12 = vmax.bf16 %v4542_v2, %v1697_v61  ;;  %v1555_v54 = vrot.slane %v4871_v5, %v4868_v3  ;;  %v4386_v61 = vld [vmem:[%s5810_s3 + $0x68] ss:$16 sps:$4 sm:$0xff]   ;;  %v4391_v5 = vld [vmem:[%s5810_s3 + $0x8c] ss:$16 sps:$4 sm:$0xff]   ;;  %p4479_p7 = pnand %p4478_p4, %p4472_p12 }
  0xd4   : > { %v1698_v6 = vadd.bf16 %v4903_v31, %v1654_v58  ;;  %v1200_v8 = vmul.bf16 %v4879_v11, %v1117_v59  ;;  %v1655_v15 = vadd.bf16 %v1623_v60, %v1231_v62  ;;  %v742_v58 = vrot.slane %v4919_v4, %v4868_v3 }
  0xd5   : > { %v1625_v62 = vmul.bf16 %v4885_v16, %v1555_v54 }
  0xd6   : > { %v1536_v10 = vpop.permute.xlu1 %1535  ;;  %v1730_v13 = vmax.bf16 %v4542_v2, %v1698_v6  ;;  %v1232_v21 = vadd.bf16 %v1200_v8, %v805_v7  ;;  %v1699_v26 = vadd.bf16 %v4903_v31, %v1655_v15  ;;  %v807_v7 = vmul.bf16 %v4883_v14, %v742_v58 }
  0xd7   : > { %v1544_v36 = vrot.slane %v1536_v10, %v4868_v3  ;;  %910 = vperm.xlu1 %4326, %v4802_v39   ;;  %v4932_v17 = vpop.permute.xlu0 %757  ;;  %v4389_v10 = vld [vmem:[%s5810_s3 + $0x88] ss:$16 sps:$4 sm:$0xff]  }
  0xd8   : > { %v4934_v18 = vcombine.low %v1729_v12, %v1730_v13  ;;  %v1731_v33 = vmax.bf16 %v4542_v2, %v1699_v26  ;;  %v4394_v13 = vld [vmem:[%s5810_s3 + $0xac] ss:$16 sps:$4 sm:$0xff]  }
  0xd9   : > { %v1624_v22 = vmul.bf16 %v4885_v16, %v1544_v36 }
  0xda   : > { %2178 = vmatmul.mubr.bf16.vlgmr.msra.gmra.mrb[0].mxu1 %v4934_v18 }
  0xdb   : > { %v1656_v24 = vadd.bf16 %v1624_v22, %v1232_v21  ;;  %v722_v25 = vpop.permute.xlu1 %721  ;;  %4327 = vset.pattern.permute.xlu1 %v4540_v0  ;;  %2187 = vmatprep.mubr.bf16.mxu1 %v4542_v2  ;;  %v4948_v27 = vpop.permute.xlu0 %397  ;;  %v4392_v22 = vld [vmem:[%s5810_s3 + $0xa8] ss:$16 sps:$4 sm:$0xff]  }
  0xdc   : > { %1337 = vperm.xlu1 %4327, %v4802_v39   ;;  %2219 = vmatpush1.bf16.msra.mxu1 %v4377_v19  ;;  %v730_v34 = vrot.slane %v722_v25, %v4868_v3 }
  0xdd   : > { %v1700_v30 = vadd.bf16 %v4903_v31, %v1656_v24  ;;  %2220 = vmatprep.subr.bf16.mxu1 %v4382_v23  ;;  %v4397_v23 = vld [vmem:[%s5810_s3 + $0xcc] ss:$16 sps:$4 sm:$0xff]  }
  0xde   : > { %v806_v56 = vmul.bf16 %v4883_v14, %v730_v34 }
  0xdf   : > { %v1732_v39 = vmax.bf16 %v4542_v2, %v1700_v30  ;;  %v4966_v48 = vpop.permute.xlu0 %421  ;;  %v4395_v30 = vld [vmem:[%s5810_s3 + $0xc8] ss:$16 sps:$4 sm:$0xff]  }
  0xe0   : > { %v1120_v35 = vpop.permute.xlu1 %1119  ;;  %4328 = vset.pattern.permute.xlu1 %v4542_v2  ;;  %2221 = vmatpush1.bf16.msra.mxu1 %v4380_v28 }
  0xe1   : > { %v1128_v50 = vrot.slane %v1120_v35, %v4868_v3  ;;  %505 = vperm.xlu1 %4328, %v4793_v37   ;;  %v4973_v51 = vcombine.low %v1731_v33, %v1732_v39  ;;  %2222 = vmatprep.subr.bf16.mxu1 %v4385_v32  ;;  %v4400_v32 = vld [vmem:[%s5810_s3 + $0xec] ss:$16 sps:$4 sm:$0xff]  }
  0xe3   : > { %v1201_v55 = vmul.bf16 %v4879_v11, %v1128_v50  ;;  %2188 = vmatmul.mubr.bf16.gmra.mrb[4].mxu1 %v4973_v51  ;;  %v4996_v6 = vpop.permute.xlu0 %445 }
  0xe4   : > { %v1131_v59 = vpop.permute.xlu1 %1130  ;;  %2197 = vmatprep.mubr.bf16.mxu1 %v4542_v2  ;;  %2223 = vmatpush1.bf16.msra.mxu1 %v4383_v49 }
  0xe5   : > { %v1139_v60 = vrot.slane %v1131_v59, %v4868_v3  ;;  %4329 = vset.pattern.permute.xlu1 %v4541_v1  ;;  %2224 = vmatprep.subr.bf16.mxu1 %v4388_v53  ;;  %v1233_v4 = vadd.bf16 %v1201_v55, %v806_v56  ;;  %v4398_v53 = vld [vmem:[%s5810_s3 + $0xe8] ss:$16 sps:$4 sm:$0xff]   ;;  %v766_v56 = vrot.slane %v4932_v17, %v4868_v3 }
  0xe6   : > { %921 = vperm.xlu1 %4329, %v4793_v37  }
  0xe7   : > { %v1202_v8 = vmul.bf16 %v4879_v11, %v1139_v60  ;;  %v1657_v15 = vadd.bf16 %v1625_v62, %v1233_v4  ;;  %v5009_v21 = vpop.permute.xlu0 %469  ;;  %v809_v62 = vmul.bf16 %v4883_v14, %v766_v56 }
  0xe8   : > { %2225 = vmatpush1.bf16.msra.mxu1 %v4386_v61 }
  0xe9   : > { %v1558_v12 = vpop.permute.xlu1 %1557  ;;  %2226 = vmatprep.subr.bf16.mxu1 %v4391_v5  ;;  %v1234_v36 = vadd.bf16 %v1202_v8, %v807_v7  ;;  %v1701_v26 = vadd.bf16 %v4903_v31, %v1657_v15 }
  0xea   : > { %v1566_v37 = vrot.slane %v1558_v12, %v4868_v3  ;;  %932 = vperm.xlu1 %4329, %v4808_v40  }
  0xeb   : > { %v1733_v39 = vmax.bf16 %v4542_v2, %v1701_v26 }
  0xec   : > { %v1626_v19 = vmul.bf16 %v4885_v16, %v1566_v37  ;;  %2227 = vmatpush1.bf16.msra.mxu1 %v4389_v10  ;;  %v1569_v33 = vpop.permute.xlu0 %1568 }
  0xed   : > { %2228 = vmatprep.subr.bf16.mxu1 %v4394_v13  ;;  %v1577_v54 = vrot.slane %v1569_v33, %v4868_v3 }
  0xee   : > { %v1658_v24 = vadd.bf16 %v1626_v19, %v1234_v36  ;;  %v746_v25 = vpop.permute.xlu1 %745  ;;  %4330 = vset.pattern.permute.xlu1 %v4540_v0 }
  0xef   : > { %1359 = vperm.xlu1 %4330, %v4808_v40   ;;  %v754_v35 = vrot.slane %v746_v25, %v4868_v3  ;;  %v1627_v5 = vmul.bf16 %v4885_v16, %v1577_v54 }
  0xf0   : > { %v1702_v28 = vadd.bf16 %v4903_v31, %v1658_v24  ;;  %2229 = vmatpush1.bf16.msra.mxu1 %v4392_v22  ;;  %v1239_v36 = vpop.permute.xlu0 %1238 }
  0xf1   : > { %2230 = vmatprep.subr.bf16.mxu1 %v4397_v23  ;;  %v808_v58 = vmul.bf16 %v4883_v14, %v754_v35 }
  0xf2   : > { %v1734_v34 = vmax.bf16 %v4542_v2, %v1702_v28 }
  0xf3   : > { %v1142_v40 = vpop.permute.xlu1 %1141  ;;  %4331 = vset.pattern.permute.xlu1 %v4542_v2 }
  0xf4   : > { %v1150_v49 = vrot.slane %v1142_v40, %v4868_v3  ;;  %529 = vperm.xlu1 %4331, %v4798_v38   ;;  %v5033_v50 = vcombine.low %v1733_v39, %v1734_v34  ;;  %2231 = vmatpush1.bf16.msra.mxu1 %v4395_v30  ;;  %v406_v30 = vrot.slane %v4948_v27, %v4868_v3 }
  0xf5   : > { %2232 = vmatprep.subr.bf16.mxu1 %v4400_v32 }
  0xf6   : > { %v1203_v55 = vmul.bf16 %v4879_v11, %v1150_v49  ;;  %2198 = vmatmul.mubr.bf16.gmra.mrb[8].mxu1 %v5033_v50  ;;  %v779_v40 = vmul.bf16 %v4883_v14, %v406_v30 }
  0xf7   : > { %v1153_v59 = vpop.permute.xlu1 %1152  ;;  %2207 = vmatprep.mubr.bf16.mxu1 %v4542_v2 }
  0xf8   : > { %v1161_v61 = vrot.slane %v1153_v59, %v4868_v3  ;;  %4332 = vset.pattern.permute.xlu1 %v4541_v1  ;;  %2233 = vmatpush1.bf16.msra.mxu1 %v4398_v53  ;;  %v1235_v60 = vadd.bf16 %v1203_v55, %v808_v58 }
  0xf9   : > { %943 = vperm.xlu1 %4332, %v4798_v38  }
  0xfa   : > { %v1204_v4 = vmul.bf16 %v4879_v11, %v1161_v61  ;;  %v1659_v7 = vadd.bf16 %v1627_v5, %v1235_v60  ;;  %v1261_v60 = vpop.permute.xlu0 %1260 }
  0xfc   : > { %v1580_v17 = vpop.permute.xlu1 %1579  ;;  %v1236_v10 = vadd.bf16 %v1204_v4, %v809_v62  ;;  %v1703_v13 = vadd.bf16 %v4903_v31, %v1659_v7 }
  0xfd   : > { %v1588_v8 = vrot.slane %v1580_v17, %v4868_v3  ;;  %954 = vperm.xlu1 %4332, %v4812_v41  }
  0xfe   : > { %v1735_v19 = vmax.bf16 %v4542_v2, %v1703_v13 }
  0xff   : > { %v1628_v12 = vmul.bf16 %v4885_v16, %v1588_v8 }
 0x101   : > { %v1660_v15 = vadd.bf16 %v1628_v12, %v1236_v10  ;;  %4334 = vset.pattern.permute.xlu1 %v4540_v0  ;;  %v386_v37 = vpop.permute.xlu1 %385  ;;  %v1269_v10 = vrot.slane %v1261_v60, %v4868_v3  ;;  %v430_v12 = vrot.slane %v4966_v48, %v4868_v3 }
 0x102   : > { %1381 = vperm.xlu1 %4334, %v4812_v41   ;;  %v394_v23 = vrot.slane %v386_v37, %v4868_v3  ;;  %v1247_v41 = vrot.slane %v1239_v36, %v4868_v3 }
 0x103   : > { %v1704_v38 = vadd.bf16 %v4903_v31, %v1660_v15  ;;  %v1599_v36 = vmul.bf16 %v4885_v16, %v1269_v10 }
 0x104   : > { %v778_v32 = vmul.bf16 %v4883_v14, %v394_v23  ;;  %v1597_v35 = vmul.bf16 %v4885_v16, %v1247_v41 }
 0x105   : > { %v1736_v22 = vmax.bf16 %v4542_v2, %v1704_v38 }
 0x106   : > { %4335 = vset.pattern.permute.xlu1 %v4542_v2  ;;  %v812_v24 = vpop.permute.xlu1 %811 }
 0x107   : > { %v820_v25 = vrot.slane %v812_v24, %v4868_v3  ;;  %553 = vperm.xlu1 %4335, %v4833_v45   ;;  %v5064_v26 = vcombine.low %v1735_v19, %v1736_v22  ;;  %v781_v19 = vmul.bf16 %v4883_v14, %v430_v12 }
 0x109   : > { %v1173_v28 = vmul.bf16 %v4879_v11, %v820_v25  ;;  %2208 = vmatmul.mubr.bf16.gmra.mrb[12].mxu1 %v5064_v26 }
 0x10a   : > { %v823_v33 = vpop.permute.xlu1 %822  ;;  %2250 = vmatprep.mubr.bf16.mxu1 %v4542_v2 }
 0x10b   : > { %v831_v39 = vrot.slane %v823_v33, %v4868_v3  ;;  %4336 = vset.pattern.permute.xlu1 %v4541_v1  ;;  %v1205_v34 = vadd.bf16 %v1173_v28, %v778_v32  ;;  %v1283_v33 = vpop.permute.xlu0 %1282 }
 0x10c   : > { %965 = vperm.xlu1 %4336, %v4833_v45  }
 0x10d   : > { %v1174_v49 = vmul.bf16 %v4879_v11, %v831_v39  ;;  %v1629_v27 = vadd.bf16 %v1597_v35, %v1205_v34 }
 0x10f   : > { %v1250_v53 = vpop.permute.xlu1 %1249  ;;  %v1206_v55 = vadd.bf16 %v1174_v49, %v779_v40  ;;  %v1673_v58 = vadd.bf16 %v4903_v31, %v1629_v27  ;;  %v1291_v27 = vrot.slane %v1283_v33, %v4868_v3 }
 0x110   : > { %v1258_v54 = vrot.slane %v1250_v53, %v4868_v3  ;;  %976 = vperm.xlu1 %4336, %v4817_v42  }
 0x111   : > { %v1705_v5 = vmax.bf16 %v4542_v2, %v1673_v58 }
 0x112   : > { %v1598_v56 = vmul.bf16 %v4885_v16, %v1258_v54  ;;  %v454_v54 = vrot.slane %v4996_v6, %v4868_v3 }
 0x114   : > { %v1630_v59 = vadd.bf16 %v1598_v56, %v1206_v55  ;;  %4337 = vset.pattern.permute.xlu1 %v4540_v0  ;;  %v410_v61 = vpop.permute.xlu1 %409 }
 0x115   : > { %1403 = vperm.xlu1 %4337, %v4817_v42   ;;  %v418_v4 = vrot.slane %v410_v61, %v4868_v3  ;;  %v1601_v61 = vmul.bf16 %v4885_v16, %v1291_v27 }
 0x116   : > { %v1674_v45 = vadd.bf16 %v4903_v31, %v1630_v59 }
 0x117   : > { %v780_v13 = vmul.bf16 %v4883_v14, %v418_v4 }
 0x118   : > { %v1706_v62 = vmax.bf16 %v4542_v2, %v1674_v45  ;;  %v783_v45 = vmul.bf16 %v4883_v14, %v454_v54 }
 0x119   : > { %4338 = vset.pattern.permute.xlu1 %v4542_v2  ;;  %v834_v17 = vpop.permute.xlu1 %833 }
 0x11a   : > { %v842_v7 = vrot.slane %v834_v17, %v4868_v3  ;;  %577 = vperm.xlu1 %4338, %v4839_v46   ;;  %v3801_v8 = vcombine.low %v1705_v5, %v1706_v62 }
 0x11c   : > { %v1175_v42 = vmul.bf16 %v4879_v11, %v842_v7  ;;  %2058 = vmatmul.mubr.bf16.vlgmr.msra.gmra.mrb[0].mxu0 %v3801_v8  ;;  %2251 = vmatmul.mubr.bf16.vlgmr.msra.gmra.mrb[16].mxu1 %v3801_v8 }
 0x11d   : > { %v845_v15 = vpop.permute.xlu1 %844  ;;  %2067 = vmatprep.mubr.bf16.mxu0 %v4542_v2  ;;  %2260 = vmatprep.mubr.bf16.mxu1 %v4542_v2 }
 0x11e   : > { %v853_v37 = vrot.slane %v845_v15, %v4868_v3  ;;  %4339 = vset.pattern.permute.xlu1 %v4541_v1  ;;  %v1207_v38 = vadd.bf16 %v1175_v42, %v780_v13  ;;  %v1305_v42 = vpop.permute.xlu0 %1304 }
 0x11f   : > { %987 = vperm.xlu1 %4339, %v4839_v46  }
 0x120   : > { %v1176_v48 = vmul.bf16 %v4879_v11, %v853_v37  ;;  %v1631_v23 = vadd.bf16 %v1599_v36, %v1207_v38 }
 0x122   : > { %v1272_v22 = vpop.permute.xlu1 %1271  ;;  %v1208_v25 = vadd.bf16 %v1176_v48, %v781_v19  ;;  %v1675_v28 = vadd.bf16 %v4903_v31, %v1631_v23  ;;  %v1313_v19 = vrot.slane %v1305_v42, %v4868_v3 }
 0x123   : > { %v1280_v24 = vrot.slane %v1272_v22, %v4868_v3  ;;  %998 = vperm.xlu1 %4339, %v4822_v43   ;;  %v478_v22 = vrot.slane %v5009_v21, %v4868_v3 }
 0x124   : > { %v1707_v39 = vmax.bf16 %v4542_v2, %v1675_v28  ;;  %v1603_v28 = vmul.bf16 %v4885_v16, %v1313_v19 }
 0x125   : > { %v1600_v41 = vmul.bf16 %v4885_v16, %v1280_v24 }
 0x127   : > { %v1632_v30 = vadd.bf16 %v1600_v41, %v1208_v25  ;;  %4340 = vset.pattern.permute.xlu1 %v4540_v0  ;;  %v434_v32 = vpop.permute.xlu1 %433 }
 0x128   : > { %1425 = vperm.xlu1 %4340, %v4822_v43   ;;  %v442_v35 = vrot.slane %v434_v32, %v4868_v3 }
 0x129   : > { %v1676_v46 = vadd.bf16 %v4903_v31, %v1632_v30  ;;  %v785_v30 = vmul.bf16 %v4883_v14, %v478_v22  ;;  %v4406_v22 = vld [vmem:[%s5812_s5 + $0x10] sm:$0xff]  }
 0x12a   : > { %v782_v55 = vmul.bf16 %v4883_v14, %v442_v35 }
 0x12b   : > { %v1708_v34 = vmax.bf16 %v4542_v2, %v1676_v46 }
 0x12c   : > { %4341 = vset.pattern.permute.xlu1 %v4542_v2  ;;  %v856_v40 = vpop.permute.xlu1 %855 }
 0x12d   : > { %v864_v49 = vrot.slane %v856_v40, %v4868_v3  ;;  %601 = vperm.xlu1 %4341, %v4844_v47   ;;  %v3802_v53 = vcombine.low %v1707_v39, %v1708_v34 }
 0x12f   : > { %v1177_v43 = vmul.bf16 %v4879_v11, %v864_v49  ;;  %2068 = vmatmul.mubr.bf16.gmra.mrb[4].mxu0 %v3802_v53  ;;  %2261 = vmatmul.mubr.bf16.gmra.mrb[20].mxu1 %v3802_v53 }
 0x130   : > { %v867_v56 = vpop.permute.xlu1 %866  ;;  %2077 = vmatprep.mubr.bf16.mxu0 %v4542_v2  ;;  %2270 = vmatprep.mubr.bf16.mxu1 %v4542_v2 }
 0x131   : > { %v875_v58 = vrot.slane %v867_v56, %v4868_v3  ;;  %4343 = vset.pattern.permute.xlu1 %v4541_v1  ;;  %v1209_v59 = vadd.bf16 %v1177_v43, %v782_v55 }
 0x132   : > { %1009 = vperm.xlu1 %4343, %v4844_v47  }
 0x133   : > { %v1178_v6 = vmul.bf16 %v4879_v11, %v875_v58  ;;  %v1633_v5 = vadd.bf16 %v1601_v61, %v1209_v59 }
 0x135   : > { %v1294_v60 = vpop.permute.xlu1 %1293  ;;  %v1210_v4 = vadd.bf16 %v1178_v6, %v783_v45  ;;  %v1677_v7 = vadd.bf16 %v4903_v31, %v1633_v5 }
 0x136   : > { %v1302_v62 = vrot.slane %v1294_v60, %v4868_v3  ;;  %1020 = vperm.xlu1 %4343, %v4827_v44  }
 0x137   : > { %v1709_v12 = vmax.bf16 %v4542_v2, %v1677_v7  ;;  %v4401_v7 = vld [vmem:[%s5812_s5 + $0x40] sm:$0xff]  }
 0x138   : > { %v1602_v17 = vmul.bf16 %v4885_v16, %v1302_v62  ;;  %3928 = vmatprep.subr.bf16.mxu0 %v4401_v7  ;;  %v4414_v7 = vld [vmem:[%s5812_s5 + $0xc0] sm:$0xff]  }
 0x139   : > { %4040 = vmatprep.subr.bf16.mxu1 %v4414_v7  ;;  %v4430_v7 = vld [vmem:[%s5812_s5 + $0xb0] sm:$0xff]  }
 0x13a   : > { %v1634_v8 = vadd.bf16 %v1602_v17, %v1210_v4  ;;  %4344 = vset.pattern.permute.xlu1 %v4540_v0  ;;  %v458_v10 = vpop.permute.xlu1 %457 }
 0x13b   : > { %1447 = vperm.xlu1 %4344, %v4827_v44   ;;  %v466_v15 = vrot.slane %v458_v10, %v4868_v3  ;;  %v1327_v44 = vpop.permute.xlu0 %1326 }
 0x13c   : > { %v1678_v47 = vadd.bf16 %v4903_v31, %v1634_v8  ;;  %v1335_v45 = vrot.slane %v1327_v44, %v4868_v3  ;;  %v4405_v44 = vld [vmem:[%s5812_s5 + $0x50] sm:$0xff]  }
 0x13d   : > { %v784_v23 = vmul.bf16 %v4883_v14, %v466_v15 }
 0x13e   : > { %v1710_v13 = vmax.bf16 %v4542_v2, %v1678_v47  ;;  %v1605_v4 = vmul.bf16 %v4885_v16, %v1335_v45  ;;  %v4402_v47 = vld [vmem:[%s5812_s5] sm:$0xff]  }
 0x13f   : > { %4345 = vset.pattern.permute.xlu1 %v4542_v2  ;;  %v878_v37 = vpop.permute.xlu1 %877  ;;  %v5157_v32 = vpop.permute.xlu0 %1348  ;;  %3929 = vmatpush3.bf16.msra.mxu0 %v4402_v47  ;;  %v4417_v47 = vld [vmem:[%s5812_s5 + $0x78] sm:$0xff]  }
 0x140   : > { %v886_v38 = vrot.slane %v878_v37, %v4868_v3  ;;  %625 = vperm.xlu1 %4345, %v4864_v63   ;;  %v3803_v36 = vcombine.low %v1709_v12, %v1710_v13  ;;  %v4404_v37 = vld [vmem:[%s5812_s5 + $0x8] sm:$0xff]  }
 0x142   : > { %v1179_v48 = vmul.bf16 %v4879_v11, %v886_v38  ;;  %2078 = vmatmul.mubr.bf16.gmra.mrb[8].mxu0 %v3803_v36  ;;  %2271 = vmatmul.mubr.bf16.gmra.mrb[24].mxu1 %v3803_v36 }
 0x143   : > { %v889_v24 = vpop.permute.xlu1 %888  ;;  %2087 = vmatprep.mubr.bf16.mxu0 %v4542_v2  ;;  %2280 = vmatprep.mubr.bf16.mxu1 %v4542_v2  ;;  %v5164_v53 = vpop.permute.xlu0 %1370 }
 0x144   : > { %v897_v25 = vrot.slane %v889_v24, %v4868_v3  ;;  %4346 = vset.pattern.permute.xlu1 %v4541_v1  ;;  %v1211_v41 = vadd.bf16 %v1179_v48, %v784_v23 }
 0x145   : > { %1031 = vperm.xlu1 %4346, %v4864_v63  }
 0x146   : > { %v1180_v21 = vmul.bf16 %v4879_v11, %v897_v25  ;;  %v1635_v33 = vadd.bf16 %v1603_v28, %v1211_v41 }
 0x147   : > { %v494_v61 = vpop.permute.xlu0 %493 }
 0x148   : > { %v1316_v46 = vpop.permute.xlu1 %1315  ;;  %v1212_v34 = vadd.bf16 %v1180_v21, %v785_v30  ;;  %v1679_v40 = vadd.bf16 %v4903_v31, %v1635_v33  ;;  %v502_v60 = vrot.slane %v494_v61, %v4868_v3  ;;  %v4408_v21 = vld [vmem:[%s5812_s5 + $0x18] sm:$0xff]   ;;  %v4409_v33 = vld [vmem:[%s5812_s5 + $0x60] sm:$0xff]  }
 0x149   : > { %v1324_v39 = vrot.slane %v1316_v46, %v4868_v3  ;;  %1042 = vperm.xlu1 %4346, %v4892_v20   ;;  %v1357_v46 = vrot.slane %v5157_v32, %v4868_v3 }
 0x14a   : > { %v1711_v43 = vmax.bf16 %v4542_v2, %v1679_v40  ;;  %v787_v8 = vmul.bf16 %v4883_v14, %v502_v60 }
 0x14b   : > { %v1604_v35 = vmul.bf16 %v4885_v16, %v1324_v39  ;;  %v518_v30 = vpop.permute.xlu0 %517 }
 0x14d   : > { %v1636_v49 = vadd.bf16 %v1604_v35, %v1212_v34  ;;  %4348 = vset.pattern.permute.xlu1 %v4540_v0  ;;  %v482_v63 = vpop.permute.xlu1 %481  ;;  %v526_v35 = vrot.slane %v518_v30, %v4868_v3  ;;  %v4423_v30 = vld [vmem:[%s5812_s5 + $0xd8] sm:$0xff]  }
 0x14e   : > { %1469 = vperm.xlu1 %4348, %v4892_v20   ;;  %v490_v55 = vrot.slane %v482_v63, %v4868_v3  ;;  %v1607_v63 = vmul.bf16 %v4885_v16, %v1357_v46 }
 0x14f   : > { %v1680_v27 = vadd.bf16 %v4903_v31, %v1636_v49  ;;  %v4410_v49 = vld [vmem:[%s5812_s5 + $0x20] sm:$0xff]   ;;  %v542_v60 = vpop.permute.xlu0 %541 }
 0x150   : > { %v786_v6 = vmul.bf16 %v4883_v14, %v490_v55  ;;  %v4411_v55 = vld [vmem:[%s5812_s5 + $0x68] sm:$0xff]  }
 0x151   : > { %v1712_v54 = vmax.bf16 %v4542_v2, %v1680_v27 }
 0x152   : > { %4349 = vset.pattern.permute.xlu1 %v4542_v2  ;;  %v900_v56 = vpop.permute.xlu1 %899 }
 0x153   : > { %v908_v58 = vrot.slane %v900_v56, %v4868_v3  ;;  %649 = vperm.xlu1 %4349, %v4955_v29   ;;  %v3804_v59 = vcombine.low %v1711_v43, %v1712_v54  ;;  %v789_v43 = vmul.bf16 %v4883_v14, %v526_v35 }
 0x155   : > { %v1181_v20 = vmul.bf16 %v4879_v11, %v908_v58  ;;  %2088 = vmatmul.mubr.bf16.gmra.mrb[12].mxu0 %v3804_v59  ;;  %2281 = vmatmul.mubr.bf16.gmra.mrb[28].mxu1 %v3804_v59  ;;  %v4412_v58 = vld [vmem:[%s5812_s5 + $0x28] sm:$0xff]  }
 0x156   : > { %v911_v5 = vpop.permute.xlu1 %910  ;;  %2097 = vmatprep.mubr.bf16.mxu0 %v4542_v2  ;;  %2290 = vmatprep.mubr.bf16.mxu1 %v4542_v2 }
 0x157   : > { %v919_v62 = vrot.slane %v911_v5, %v4868_v3  ;;  %4350 = vset.pattern.permute.xlu1 %v4541_v1  ;;  %v1213_v17 = vadd.bf16 %v1181_v20, %v786_v6  ;;  %v4413_v6 = vld [vmem:[%s5812_s5 + $0x70] sm:$0xff]  }
 0x158   : > { %1053 = vperm.xlu1 %4350, %v4955_v29   ;;  %v4403_v29 = vld [vmem:[%s5812_s5 + $0x48] sm:$0xff]   ;;  %v4415_v5 = vld [vmem:[%s5812_s5 + $0x30] sm:$0xff]  }
 0x159   : > { %v1182_v10 = vmul.bf16 %v4879_v11, %v919_v62  ;;  %v1637_v1 = vadd.bf16 %v1605_v4, %v1213_v17  ;;  %3930 = vmatprep.subr.bf16.mxu0 %v4403_v29 }
 0x15a   : > { %3931 = vmatpush3.bf16.msra.mxu0 %v4404_v37  ;;  %v4419_v37 = vld [vmem:[%s5812_s5 + $0xc8] sm:$0xff]  }
 0x15b   : > { %v1338_v42 = vpop.permute.xlu1 %1337  ;;  %v1214_v13 = vadd.bf16 %v1182_v10, %v787_v8  ;;  %v1681_v19 = vadd.bf16 %v4903_v31, %v1637_v1  ;;  %3932 = vmatprep.subr.bf16.mxu0 %v4405_v44  ;;  %v4416_v10 = vld [vmem:[%s5812_s5 + $0x80] sm:$0xff]   ;;  %v1379_v44 = vrot.slane %v5164_v53, %v4868_v3 }
 0x15c   : > { %v1346_v12 = vrot.slane %v1338_v42, %v4868_v3  ;;  %1064 = vperm.xlu1 %4350, %v4925_v9   ;;  %v4418_v42 = vld [vmem:[%s5812_s5 + $0x38] sm:$0xff]   ;;  %4041 = vmatpush3.bf16.msra.mxu1 %v4416_v10 }
 0x15d   : > { %v1713_v23 = vmax.bf16 %v4542_v2, %v1681_v19  ;;  %v4420_v19 = vld [vmem:[%s5812_s5 + $0x88] sm:$0xff]   ;;  %4042 = vmatprep.subr.bf16.mxu1 %v4419_v37  ;;  %v4431_v10 = vld [vmem:[%s5812_s5 + $0xf8] sm:$0xff]  }
 0x15e   : > { %v1606_v15 = vmul.bf16 %v4885_v16, %v1346_v12  ;;  %3933 = vmatpush3.bf16.msra.mxu0 %v4406_v22  ;;  %v4432_v37 = vld [vmem:[%s5812_s5 + $0xb8] sm:$0xff]  }
 0x160   : > { %v1638_v38 = vadd.bf16 %v1606_v15, %v1214_v13  ;;  %4352 = vset.pattern.permute.xlu1 %v4540_v0  ;;  %v506_v36 = vpop.permute.xlu1 %505  ;;  %v5269_v15 = vpop.permute.xlu0 %565  ;;  %4043 = vmatpush3.bf16.msra.mxu1 %v4420_v19 }
 0x161   : > { %1491 = vperm.xlu1 %4352, %v4925_v9   ;;  %v514_v24 = vrot.slane %v506_v36, %v4868_v3  ;;  %v4407_v9 = vld [vmem:[%s5812_s5 + $0x58] sm:$0xff]  }
 0x162   : > { %v1682_v48 = vadd.bf16 %v4903_v31, %v1638_v38  ;;  %3934 = vmatprep.subr.bf16.mxu0 %v4407_v9  ;;  %v1609_v9 = vmul.bf16 %v4885_v16, %v1379_v44 }
 0x163   : > { %v788_v34 = vmul.bf16 %v4883_v14, %v514_v24  ;;  %3935 = vmatpush3.bf16.msra.mxu0 %v4408_v21  ;;  %v4421_v24 = vld [vmem:[%s5812_s5 + $0xd0] sm:$0xff]  }
 0x164   : > { %v1714_v0 = vmax.bf16 %v4542_v2, %v1682_v48  ;;  %3936 = vmatprep.subr.bf16.mxu0 %v4409_v33  ;;  %4044 = vmatprep.subr.bf16.mxu1 %v4421_v24 }
 0x165   : > { %v922_v25 = vpop.permute.xlu1 %921 }
 0x166   : > { %v930_v41 = vrot.slane %v922_v25, %v4868_v3  ;;  %v3805_v28 = vcombine.low %v1713_v23, %v1714_v0  ;;  %v550_v23 = vrot.slane %v542_v60, %v4868_v3  ;;  %v4422_v25 = vld [vmem:[%s5812_s5 + $0x90] sm:$0xff]  }
 0x167   : > { %3937 = vmatpush3.bf16.msra.mxu0 %v4410_v49  ;;  %4045 = vmatpush3.bf16.msra.mxu1 %v4422_v25 }
 0x168   : > { %v1183_v39 = vmul.bf16 %v4879_v11, %v930_v41  ;;  %2098 = vmatmul.mubr.bf16.gmra.mrb[16].mxu0 %v3805_v28  ;;  %2291 = vmatmul.mubr.bf16.gmra.mrb[32].mxu1 %v3805_v28  ;;  %v5293_v28 = vpop.permute.xlu0 %589  ;;  %v791_v21 = vmul.bf16 %v4883_v14, %v550_v23 }
 0x169   : > { %v933_v40 = vpop.permute.xlu1 %932  ;;  %2107 = vmatprep.mubr.bf16.mxu0 %v4542_v2  ;;  %2300 = vmatprep.mubr.bf16.mxu1 %v4542_v2 }
 0x16a   : > { %v941_v32 = vrot.slane %v933_v40, %v4868_v3  ;;  %v1215_v27 = vadd.bf16 %v1183_v39, %v788_v34  ;;  %3938 = vmatprep.subr.bf16.mxu0 %v4411_v55  ;;  %v4424_v39 = vld [vmem:[%s5812_s5 + $0x98] sm:$0xff]   ;;  %4046 = vmatprep.subr.bf16.mxu1 %v4423_v30 }
 0x16b   : > { %3939 = vmatpush3.bf16.msra.mxu0 %v4412_v58  ;;  %4047 = vmatpush3.bf16.msra.mxu1 %v4424_v39  ;;  %v4427_v58 = vld [vmem:[%s5812_s5 + $0xe8] sm:$0xff]  }
 0x16c   : > { %v1184_v54 = vmul.bf16 %v4879_v11, %v941_v32  ;;  %v1639_v59 = vadd.bf16 %v1607_v63, %v1215_v27  ;;  %3940 = vmatprep.subr.bf16.mxu0 %v4413_v6  ;;  %v5305_v49 = vpop.permute.xlu0 %613  ;;  %v4425_v63 = vld [vmem:[%s5812_s5 + $0xe0] sm:$0xff]  }
 0x16d   : > { %v4426_v27 = vld [vmem:[%s5812_s5 + $0xa0] sm:$0xff]   ;;  %4048 = vmatprep.subr.bf16.mxu1 %v4425_v63 }
 0x16e   : > { %v1360_v56 = vpop.permute.xlu1 %1359  ;;  %v1216_v45 = vadd.bf16 %v1184_v54, %v789_v43  ;;  %v1683_v17 = vadd.bf16 %v4903_v31, %v1639_v59  ;;  %v4428_v59 = vld [vmem:[%s5812_s5 + $0xa8] sm:$0xff]  }
 0x16f   : > { %v1368_v61 = vrot.slane %v1360_v56, %v4868_v3  ;;  %3941 = vmatpush3.bf16.msra.mxu0 %v4415_v5  ;;  %4049 = vmatpush3.bf16.msra.mxu1 %v4426_v27 }
 0x170   : > { %v1715_v1 = vmax.bf16 %v4542_v2, %v1683_v17  ;;  %3942 = vmatprep.subr.bf16.mxu0 %v4417_v47  ;;  %4050 = vmatprep.subr.bf16.mxu1 %v4427_v58  ;;  %v574_v47 = vrot.slane %v5269_v15, %v4868_v3 }
 0x171   : > { %v1608_v20 = vmul.bf16 %v4885_v16, %v1368_v61  ;;  %v1393_v61 = vpop.permute.xlu0 %1392 }
 0x172   : > { %v1401_v17 = vrot.slane %v1393_v61, %v4868_v3  ;;  %v793_v15 = vmul.bf16 %v4883_v14, %v574_v47 }
 0x173   : > { %v1640_v62 = vadd.bf16 %v1608_v20, %v1216_v45  ;;  %v530_v4 = vpop.permute.xlu1 %529  ;;  %3943 = vmatpush3.bf16.msra.mxu0 %v4418_v42  ;;  %4051 = vmatpush3.bf16.msra.mxu1 %v4428_v59 }
 0x174   : > { %v538_v29 = vrot.slane %v530_v4, %v4868_v3  ;;  %v4429_v4 = vld [vmem:[%s5812_s5 + $0xf0] sm:$0xff]  }
 0x175   : > { %v1684_v8 = vadd.bf16 %v4903_v31, %v1640_v62  ;;  %4052 = vmatprep.subr.bf16.mxu1 %v4429_v4  ;;  %v1415_v25 = vpop.permute.xlu0 %1414 }
 0x176   : > { %v790_v22 = vmul.bf16 %v4883_v14, %v538_v29  ;;  %v1423_v39 = vrot.slane %v1415_v25, %v4868_v3 }
 0x177   : > { %v1716_v12 = vmax.bf16 %v4542_v2, %v1684_v8  ;;  %4053 = vmatpush3.bf16.msra.mxu1 %v4430_v7 }
 0x178   : > { %v944_v13 = vpop.permute.xlu1 %943  ;;  %4054 = vmatprep.subr.bf16.mxu1 %v4431_v10 }
 0x179   : > { %v952_v38 = vrot.slane %v944_v13, %v4868_v3  ;;  %v3806_v36 = vcombine.low %v1715_v1, %v1716_v12  ;;  %v1611_v13 = vmul.bf16 %v4885_v16, %v1401_v17 }
 0x17b   : > { %v1185_v48 = vmul.bf16 %v4879_v11, %v952_v38  ;;  %2108 = vmatmul.mubr.bf16.gmra.mrb[20].mxu0 %v3806_v36  ;;  %2301 = vmatmul.mubr.bf16.gmra.mrb[36].mxu1 %v3806_v36 }
 0x17c   : > { %v955_v0 = vpop.permute.xlu1 %954  ;;  %2117 = vmatprep.mubr.bf16.mxu0 %v4542_v2  ;;  %2310 = vmatprep.mubr.bf16.mxu1 %v4542_v2 }
 0x17d   : > { %v963_v53 = vrot.slane %v955_v0, %v4868_v3  ;;  %v1217_v41 = vadd.bf16 %v1185_v48, %v790_v22  ;;  %4055 = vmatpush3.bf16.msra.mxu1 %v4432_v37 }
 0x17f   : > { %v1186_v46 = vmul.bf16 %v4879_v11, %v963_v53  ;;  %v1641_v34 = vadd.bf16 %v1609_v9, %v1217_v41 }
 0x181   : > { %v1382_v33 = vpop.permute.xlu1 %1381  ;;  %v1218_v40 = vadd.bf16 %v1186_v46, %v791_v21  ;;  %v1685_v55 = vadd.bf16 %v4903_v31, %v1641_v34 }
 0x182   : > { %v1390_v35 = vrot.slane %v1382_v33, %v4868_v3 }
 0x183   : > { %v1717_v45 = vmax.bf16 %v4542_v2, %v1685_v55 }
 0x184   : > { %v1610_v32 = vmul.bf16 %v4885_v16, %v1390_v35  ;;  %v598_v35 = vrot.slane %v5293_v28, %v4868_v3 }
 0x186   : > { %v1642_v43 = vadd.bf16 %v1610_v32, %v1218_v40  ;;  %v554_v54 = vpop.permute.xlu1 %553 }
 0x187   : > { %v562_v6 = vrot.slane %v554_v54, %v4868_v3  ;;  %v795_v54 = vmul.bf16 %v4883_v14, %v598_v35 }
 0x188   : > { %v1686_v56 = vadd.bf16 %v4903_v31, %v1642_v43  ;;  %v1613_v43 = vmul.bf16 %v4885_v16, %v1423_v39 }
 0x189   : > { %v792_v42 = vmul.bf16 %v4883_v14, %v562_v6 }
 0x18a   : > { %v1718_v20 = vmax.bf16 %v4542_v2, %v1686_v56 }
 0x18b   : > { %v966_v60 = vpop.permute.xlu1 %965 }
 0x18c   : > { %v974_v5 = vrot.slane %v966_v60, %v4868_v3  ;;  %v3807_v62 = vcombine.low %v1717_v45, %v1718_v20 }
 0x18e   : > { %v1187_v8 = vmul.bf16 %v4879_v11, %v974_v5  ;;  %2118 = vmatmul.mubr.bf16.gmra.mrb[24].mxu0 %v3807_v62  ;;  %2311 = vmatmul.mubr.bf16.gmra.mrb[40].mxu1 %v3807_v62 }
 0x18f   : > { %v977_v1 = vpop.permute.xlu1 %976  ;;  %2127 = vmatprep.mubr.bf16.mxu0 %v4542_v2  ;;  %2320 = vmatprep.mubr.bf16.mxu1 %v4542_v2 }
 0x190   : > { %v985_v12 = vrot.slane %v977_v1, %v4868_v3  ;;  %v1219_v29 = vadd.bf16 %v1187_v8, %v792_v42  ;;  %v1437_v8 = vpop.permute.xlu0 %1436 }
 0x191   : > { %v1445_v37 = vrot.slane %v1437_v8, %v4868_v3 }
 0x192   : > { %v1188_v38 = vmul.bf16 %v4879_v11, %v985_v12  ;;  %v1643_v19 = vadd.bf16 %v1611_v13, %v1219_v29 }
 0x194   : > { %v1404_v36 = vpop.permute.xlu1 %1403  ;;  %v1220_v48 = vadd.bf16 %v1188_v38, %v793_v15  ;;  %v1687_v23 = vadd.bf16 %v4903_v31, %v1643_v19 }
 0x195   : > { %v1412_v44 = vrot.slane %v1404_v36, %v4868_v3 }
 0x196   : > { %v1719_v9 = vmax.bf16 %v4542_v2, %v1687_v23  ;;  %v1615_v23 = vmul.bf16 %v4885_v16, %v1445_v37 }
 0x197   : > { %v1612_v22 = vmul.bf16 %v4885_v16, %v1412_v44 }
 0x199   : > { %v1644_v0 = vadd.bf16 %v1612_v22, %v1220_v48  ;;  %v578_v24 = vpop.permute.xlu1 %577  ;;  %v622_v48 = vrot.slane %v5305_v49, %v4868_v3 }
 0x19a   : > { %v586_v30 = vrot.slane %v578_v24, %v4868_v3 }
 0x19b   : > { %v1688_v53 = vadd.bf16 %v4903_v31, %v1644_v0  ;;  %v797_v49 = vmul.bf16 %v4883_v14, %v622_v48 }
 0x19c   : > { %v794_v40 = vmul.bf16 %v4883_v14, %v586_v30 }
 0x19d   : > { %v1720_v41 = vmax.bf16 %v4542_v2, %v1688_v53 }
 0x19e   : > { %v988_v21 = vpop.permute.xlu1 %987 }
 0x19f   : > { %v996_v46 = vrot.slane %v988_v21, %v4868_v3  ;;  %v3808_v33 = vcombine.low %v1719_v9, %v1720_v41 }
 0x1a1   : > { %v1189_v34 = vmul.bf16 %v4879_v11, %v996_v46  ;;  %2128 = vmatmul.mubr.bf16.gmra.mrb[28].mxu0 %v3808_v33  ;;  %2321 = vmatmul.mubr.bf16.gmra.mrb[44].mxu1 %v3808_v33 }
 0x1a2   : > { %v999_v32 = vpop.permute.xlu1 %998  ;;  %2137 = vmatprep.mubr.bf16.mxu0 %v4542_v2  ;;  %2330 = vmatprep.mubr.bf16.mxu1 %v4542_v2 }
 0x1a3   : > { %v1007_v63 = vrot.slane %v999_v32, %v4868_v3  ;;  %v1221_v27 = vadd.bf16 %v1189_v34, %v794_v40 }
 0x1a5   : > { %v1190_v55 = vmul.bf16 %v4879_v11, %v1007_v63  ;;  %v1645_v58 = vadd.bf16 %v1613_v43, %v1221_v27  ;;  %v1459_v63 = vpop.permute.xlu0 %1458 }
 0x1a7   : > { %v1426_v56 = vpop.permute.xlu1 %1425  ;;  %v1222_v59 = vadd.bf16 %v1190_v55, %v795_v54  ;;  %v1689_v45 = vadd.bf16 %v4903_v31, %v1645_v58 }
 0x1a8   : > { %v1434_v28 = vrot.slane %v1426_v56, %v4868_v3 }
 0x1a9   : > { %v1721_v10 = vmax.bf16 %v4542_v2, %v1689_v45  ;;  %v1467_v45 = vrot.slane %v1459_v63, %v4868_v3 }
 0x1aa   : > { %v1614_v61 = vmul.bf16 %v4885_v16, %v1434_v28  ;;  %v638_v28 = vpop.permute.xlu0 %637 }
 0x1ac   : > { %v1646_v20 = vadd.bf16 %v1614_v61, %v1222_v59  ;;  %v602_v6 = vpop.permute.xlu1 %601 }
 0x1ad   : > { %v5370_v60 = vpop.f32.mrb[0].mxu1  ;;  %v610_v42 = vrot.slane %v602_v6, %v4868_v3 }
 0x1ae   : > { %v1690_v5 = vadd.bf16 %v4903_v31, %v1646_v20  ;;  %v5373_v62 = vpop.f32.mrb[1].mxu1  ;;  %v646_v20 = vrot.slane %v638_v28, %v4868_v3 }
 0x1af   : > { %v5375_v4 = vpop.f32.mrb[2].mxu1  ;;  %v796_v38 = vmul.bf16 %v4883_v14, %v610_v42 }
 0x1b0   : > { %v2459_v17 = vpack.c.bf16 %v5375_v4, %v5370_v60  ;;  %v5379_v7 = vpop.f32.mrb[3].mxu1  ;;  %v1722_v47 = vmax.bf16 %v4542_v2, %v1690_v5 }
 0x1b1   : > { %v2460_v1 = vpack.c.bf16 %v5379_v7, %v5373_v62  ;;  %v1010_v12 = vpop.permute.xlu1 %1009 }
 0x1b2   : > { %v1018_v29 = vrot.slane %v1010_v12, %v4868_v3  ;;  %v3809_v13 = vcombine.low %v1721_v10, %v1722_v47  ;;  %v1617_v12 = vmul.bf16 %v4885_v16, %v1467_v45 }
 0x1b4   : > { %v1191_v15 = vmul.bf16 %v4879_v11, %v1018_v29  ;;  %2138 = vmatmul.mubr.bf16.gmra.mrb[32].mxu0 %v3809_v13  ;;  %2331 = vmatmul.mubr.bf16.gmra.mrb[48].mxu1 %v3809_v13  ;;  %v799_v29 = vmul.bf16 %v4883_v14, %v646_v20  ;;  %v4544_v20 = vmov 1966171168  }
 0x1b5   : > { %v1021_v36 = vpop.permute.xlu1 %1020  ;;  %2147 = vmatprep.mubr.bf16.mxu0 %v4542_v2  ;;  %2340 = vmatprep.mubr.bf16.mxu1 %v4542_v2 }
 0x1b6   : > { %v1029_v19 = vrot.slane %v1021_v36, %v4868_v3  ;;  %v5393_v44 = vpop.f32.mrb[4].mxu1  ;;  %v1223_v22 = vadd.bf16 %v1191_v15, %v796_v38 }
 0x1b7   : > { %v5398_v0 = vpop.f32.mrb[5].mxu1 }
 0x1b8   : > { %v5400_v24 = vpop.f32.mrb[6].mxu1  ;;  %v1192_v53 = vmul.bf16 %v4879_v11, %v1029_v19  ;;  %v1647_v21 = vadd.bf16 %v1615_v23, %v1223_v22 }
 0x1b9   : > { %v2463_v25 = vpack.c.bf16 %v5400_v24, %v5393_v44  ;;  %v5405_v9 = vpop.f32.mrb[7].mxu1 }
 0x1ba   : > { %v2464_v41 = vpack.c.bf16 %v5405_v9, %v5398_v0  ;;  %v1448_v30 = vpop.permute.xlu1 %1447  ;;  %v1224_v33 = vadd.bf16 %v1192_v53, %v797_v49  ;;  %v1691_v34 = vadd.bf16 %v4903_v31, %v1647_v21  ;;  %v662_v53 = vpop.permute.xlu0 %661 }
 0x1bb   : > { %v1456_v46 = vrot.slane %v1448_v30, %v4868_v3  ;;  %v670_v28 = vrot.slane %v662_v53, %v4868_v3 }
 0x1bc   : > { %v1723_v27 = vmax.bf16 %v4542_v2, %v1691_v34 }
 0x1bd   : > { %v1616_v39 = vmul.bf16 %v4885_v16, %v1456_v46 }
 0x1bf   : > { %v1648_v35 = vadd.bf16 %v1616_v39, %v1224_v33  ;;  %v626_v40 = vpop.permute.xlu1 %625  ;;  %v1481_v33 = vpop.permute.xlu0 %1480 }
 0x1c0   : > { %v634_v54 = vrot.slane %v626_v40, %v4868_v3 }
 0x1c1   : > { %v1692_v32 = vadd.bf16 %v4903_v31, %v1648_v35 }
 0x1c2   : > { %v798_v61 = vmul.bf16 %v4883_v14, %v634_v54 }
 0x1c3   : > { %v1724_v43 = vmax.bf16 %v4542_v2, %v1692_v32 }
 0x1c4   : > { %v1032_v55 = vpop.permute.xlu1 %1031 }
 0x1c5   : > { %v1040_v56 = vrot.slane %v1032_v55, %v4868_v3  ;;  %v3810_v58 = vcombine.low %v1723_v27, %v1724_v43  ;;  %v1489_v27 = vrot.slane %v1481_v33, %v4868_v3 }
 0x1c7   : > { %v1193_v59 = vmul.bf16 %v4879_v11, %v1040_v56  ;;  %2148 = vmatmul.mubr.bf16.gmra.mrb[36].mxu0 %v3810_v58  ;;  %2341 = vmatmul.mubr.bf16.gmra.mrb[52].mxu1 %v3810_v58 }
 0x1c8   : > { %v1043_v6 = vpop.permute.xlu1 %1042  ;;  %2157 = vmatprep.mubr.bf16.mxu0 %v4542_v2  ;;  %2350 = vmatprep.mubr.bf16.mxu1 %v4542_v2 }
 0x1c9   : > { %v1051_v5 = vrot.slane %v1043_v6, %v4868_v3  ;;  %v5425_v8 = vpop.f32.mrb[8].mxu1  ;;  %v1225_v10 = vadd.bf16 %v1193_v59, %v798_v61  ;;  %v1619_v61 = vmul.bf16 %v4885_v16, %v1489_v27  ;;  %v2486_v6 = vunpack.c.l.s4 %v4544_v20 }
 0x1ca   : > { %v5427_v47 = vpop.f32.mrb[9].mxu1 }
 0x1cb   : > { %v5429_v42 = vpop.f32.mrb[10].mxu1  ;;  %v1194_v13 = vmul.bf16 %v4879_v11, %v1051_v5  ;;  %v1649_v19 = vadd.bf16 %v1617_v12, %v1225_v10 }
 0x1cc   : > { %v2467_v37 = vpack.c.bf16 %v5429_v42, %v5425_v8  ;;  %v5436_v15 = vpop.f32.mrb[11].mxu1 }
 0x1cd   : > { %v2468_v38 = vpack.c.bf16 %v5436_v15, %v5427_v47  ;;  %v1470_v36 = vpop.permute.xlu1 %1469  ;;  %v1226_v22 = vadd.bf16 %v1194_v13, %v799_v29  ;;  %v1693_v21 = vadd.bf16 %v4903_v31, %v1649_v19  ;;  %v801_v19 = vmul.bf16 %v4883_v14, %v670_v28 }
 0x1ce   : > { %v1478_v48 = vrot.slane %v1470_v36, %v4868_v3 }
 0x1cf   : > { %v1725_v39 = vmax.bf16 %v4542_v2, %v1693_v21 }
 0x1d0   : > { %v1618_v23 = vmul.bf16 %v4885_v16, %v1478_v48 }
 0x1d2   : > { %v1650_v30 = vadd.bf16 %v1618_v23, %v1226_v22  ;;  %v650_v49 = vpop.permute.xlu1 %649  ;;  %v2487_v23 = vunpack.c.0.s8 %v2486_v6 }
 0x1d3   : > { %v658_v35 = vrot.slane %v650_v49, %v4868_v3 }
 0x1d4   : > { %v1694_v46 = vadd.bf16 %v4903_v31, %v1650_v30 }
 0x1d5   : > { %v800_v54 = vmul.bf16 %v4883_v14, %v658_v35 }
 0x1d6   : > { %v1726_v34 = vmax.bf16 %v4542_v2, %v1694_v46  ;;  %v2490_v46 = vsub.s32 %v2487_v23, %v4853_v52 }
 0x1d7   : > { %v1054_v40 = vpop.permute.xlu1 %1053 }
 0x1d8   : > { %v1062_v32 = vrot.slane %v1054_v40, %v4868_v3  ;;  %v3811_v63 = vcombine.low %v1725_v39, %v1726_v34 }
 0x1da   : > { %v1195_v43 = vmul.bf16 %v4879_v11, %v1062_v32  ;;  %2158 = vmatmul.mubr.bf16.gmra.mrb[40].mxu0 %v3811_v63  ;;  %2351 = vmatmul.mubr.bf16.gmra.mrb[56].mxu1 %v3811_v63 }
 0x1db   : > { %v1065_v55 = vpop.permute.xlu1 %1064  ;;  %2167 = vmatprep.mubr.bf16.mxu0 %v4542_v2  ;;  %2360 = vmatprep.mubr.bf16.mxu1 %v4542_v2 }
 0x1dc   : > { %v1073_v56 = vrot.slane %v1065_v55, %v4868_v3  ;;  %v5454_v58 = vpop.f32.mrb[12].mxu1  ;;  %v1227_v59 = vadd.bf16 %v1195_v43, %v800_v54 }
 0x1dd   : > { %v5458_v45 = vpop.f32.mrb[13].mxu1 }
 0x1de   : > { %v5460_v5 = vpop.f32.mrb[14].mxu1  ;;  %v1196_v10 = vmul.bf16 %v4879_v11, %v1073_v56  ;;  %v1651_v48 = vadd.bf16 %v1619_v61, %v1227_v59  ;;  %v3849_v11 = vld.sshfl [vmem:[%s5811_s4] sm:$0x33 pattern:$0x75316420] }
 0x1df   : > { %v2471_v12 = vpack.c.bf16 %v5460_v5, %v5454_v58  ;;  %v5465_v29 = vpop.f32.mrb[15].mxu1  ;;  %v2484_v33 = vcombine.high %v3849_v11, %v3849_v11  ;;  %v2491_v34 = vrot.slane %v3849_v11, %v2490_v46 }
 0x1e0   : > { %v2472_v13 = vpack.c.bf16 %v5465_v29, %v5458_v45  ;;  %v1492_v36 = vpop.permute.xlu1 %1491  ;;  %v1228_v53 = vadd.bf16 %v1196_v10, %v801_v19  ;;  %v1695_v49 = vadd.bf16 %v4903_v31, %v1651_v48 }
 0x1e1   : > { %v1500_v22 = vrot.slane %v1492_v36, %v4868_v3  ;;  %v2498_v35 = vrot.slane %v2484_v33, %v2490_v46 }
 0x1e2   : > { %v1727_v14 = vmax.bf16 %v4542_v2, %v1695_v49  ;;  %v2499_v49 = vcombine.high %v2491_v34, %v2491_v34 }
 0x1e3   : > { %v1620_v30 = vmul.bf16 %v4885_v16, %v1500_v22  ;;  %v2502_v16 = vpack.i.b16 %v2491_v34, %v2491_v34  ;;  %v2509_v32 = vpack.i.b16 %v2498_v35, %v2498_v35  ;;  %v2500_v23 = vcombine.high %v2498_v35, %v2498_v35 }
 0x1e5   : > { %v1652_v21 = vadd.bf16 %v1620_v30, %v1228_v53  ;;  %v5485_v20 = vrot.slane %v2509_v32, %v4858_v57  ;;  %v2523_v53 = vpack.i.b16 %v2500_v23, %v2500_v23  ;;  %v2516_v32 = vpack.i.b16 %v2499_v49, %v2499_v49 }
 0x1e7   : > { %v1696_v39 = vadd.bf16 %v4903_v31, %v1652_v21  ;;  %v5482_v31 = vrot.slane %v2502_v16, %v4858_v57 }
 0x1e9   : > { %v1728_v3 = vmax.bf16 %v4542_v2, %v1696_v39  ;;  %v2585_v15 = vadd.bf16 %v5482_v31, %v2467_v37 }
 0x1eb   : > { %v3812_v40 = vcombine.low %v1727_v14, %v1728_v3 }
 0x1ed   : > { %2168 = vmatmul.mubr.bf16.gmra.mrb[44].mxu0 %v3812_v40  ;;  %2361 = vmatmul.mubr.bf16.gmra.mrb[60].mxu1 %v3812_v40 }
 0x1ee   : > { %2370 = vmatprep.mubr.bf16.mxu1 %v4542_v2 }
 0x1ef   : > { %v2059_v63 = vpop.f32.mrb[0].mxu0  ;;  %v2252_v27 = vpop.f32.mrb[16].mxu1 }
 0x1f0   : > { %v2061_v43 = vpop.f32.mrb[1].mxu0  ;;  %v2254_v52 = vpop.f32.mrb[17].mxu1 }
 0x1f1   : > { %v2063_v54 = vpop.f32.mrb[2].mxu0  ;;  %v2256_v55 = vpop.f32.mrb[18].mxu1 }
 0x1f2   : > { %v2411_v56 = vpack.c.bf16 %v2063_v54, %v2059_v63  ;;  %v2413_v28 = vpack.c.bf16 %v2256_v55, %v2252_v27  ;;  %v2065_v59 = vpop.f32.mrb[3].mxu0  ;;  %v2258_v61 = vpop.f32.mrb[19].mxu1 }
 0x1f3   : > { %v2412_v6 = vpack.c.bf16 %v2065_v59, %v2061_v43  ;;  %v2414_v10 = vpack.c.bf16 %v2258_v61, %v2254_v52  ;;  %v5505_v52 = vrot.slane %v2516_v32, %v4858_v57 }
 0x1f4   : > { %v2529_v36 = vadd.bf16 %v5482_v31, %v2411_v56 }
 0x1f5   : > { %v2530_v19 = vadd.bf16 %v5485_v20, %v2412_v6  ;;  %2371 = vmatmul.mubr.bf16.gmra.mrb[64].mxu1 %v4934_v18  ;;  %v5496_v18 = vrot.slane %v2523_v53, %v4858_v57  ;;  %v2531_v55 = vadd.bf16 %v5505_v52, %v2413_v28 }
 0x1f6   : > { %2380 = vmatprep.mubr.bf16.mxu1 %v4542_v2  ;;  %v2593_v22 = vmax.bf16 %v4542_v2, %v2529_v36 }
 0x1f7   : > { %v2594_v48 = vmax.bf16 %v4542_v2, %v2530_v19  ;;  %v2532_v63 = vadd.bf16 %v5496_v18, %v2414_v10  ;;  %v2595_v59 = vmax.bf16 %v4542_v2, %v2531_v55 }
 0x1f9   : > { %2945 = vmatprep.mubr.bf16.mxu0 %v2594_v48 }
 0x1fa   : > { %2946 = vmatmul.mubr.bf16.vlgmr.msra.gmra.mrb[48].mxu0 %v2593_v22 }
 0x1fd   : > { %2381 = vmatmul.mubr.bf16.gmra.mrb[68].mxu1 %v4973_v51 }
 0x1fe   : > { %2390 = vmatprep.mubr.bf16.mxu1 %v4542_v2 }
 0x202   : > { %v2069_v30 = vpop.f32.mrb[4].mxu0  ;;  %v2262_v11 = vpop.f32.mrb[20].mxu1 }
 0x203   : > { %v2071_v21 = vpop.f32.mrb[5].mxu0  ;;  %v2264_v46 = vpop.f32.mrb[21].mxu1 }
 0x204   : > { %v2073_v33 = vpop.f32.mrb[6].mxu0  ;;  %v2266_v39 = vpop.f32.mrb[22].mxu1 }
 0x205   : > { %v2415_v14 = vpack.c.bf16 %v2073_v33, %v2069_v30  ;;  %v2417_v3 = vpack.c.bf16 %v2266_v39, %v2262_v11  ;;  %v2075_v40 = vpop.f32.mrb[7].mxu0  ;;  %v2268_v16 = vpop.f32.mrb[23].mxu1  ;;  %2391 = vmatmul.mubr.bf16.gmra.mrb[72].mxu1 %v5033_v50  ;;  %v2596_v50 = vmax.bf16 %v4542_v2, %v2532_v63 }
 0x206   : > { %v2416_v51 = vpack.c.bf16 %v2075_v40, %v2071_v21  ;;  %v2418_v35 = vpack.c.bf16 %v2268_v16, %v2264_v46  ;;  %2400 = vmatprep.mubr.bf16.mxu1 %v4542_v2 }
 0x207   : > { %v2533_v34 = vadd.bf16 %v5482_v31, %v2415_v14  ;;  %v2535_v48 = vadd.bf16 %v5505_v52, %v2417_v3 }
 0x208   : > { %v2534_v27 = vadd.bf16 %v5485_v20, %v2416_v51  ;;  %v2536_v56 = vadd.bf16 %v5496_v18, %v2418_v35 }
 0x209   : > { %v2597_v54 = vmax.bf16 %v4542_v2, %v2533_v34  ;;  %v2599_v39 = vmax.bf16 %v4542_v2, %v2535_v48 }
 0x20a   : > { %v2598_v43 = vmax.bf16 %v4542_v2, %v2534_v27  ;;  %v2600_v61 = vmax.bf16 %v4542_v2, %v2536_v56 }
 0x20c   : > { %2953 = vmatprep.mubr.bf16.mxu0 %v2598_v43 }
 0x20d   : > { %2401 = vmatmul.mubr.bf16.gmra.mrb[76].mxu1 %v5064_v26  ;;  %2954 = vmatmul.mubr.bf16.gmra.mrb[52].mxu0 %v2597_v54 }
 0x20e   : > { %3106 = vmatprep.mubr.bf16.mxu1 %v2596_v50 }
 0x215   : > { %v2079_v6 = vpop.f32.mrb[8].mxu0  ;;  %v2272_v10 = vpop.f32.mrb[24].mxu1  ;;  %3107 = vmatmul.mubr.bf16.vlgmr.msra.gmra.mrb[80].mxu1 %v2595_v59 }
 0x216   : > { %v2081_v36 = vpop.f32.mrb[9].mxu0  ;;  %v2274_v19 = vpop.f32.mrb[25].mxu1  ;;  %3114 = vmatprep.mubr.bf16.mxu1 %v2600_v61 }
 0x217   : > { %v2083_v22 = vpop.f32.mrb[10].mxu0  ;;  %v2276_v26 = vpop.f32.mrb[26].mxu1 }
 0x218   : > { %v2419_v23 = vpack.c.bf16 %v2083_v22, %v2079_v6  ;;  %v2421_v53 = vpack.c.bf16 %v2276_v26, %v2272_v10  ;;  %v2085_v30 = vpop.f32.mrb[11].mxu0  ;;  %v2278_v28 = vpop.f32.mrb[27].mxu1 }
 0x219   : > { %v2420_v11 = vpack.c.bf16 %v2085_v30, %v2081_v36  ;;  %v2422_v49 = vpack.c.bf16 %v2278_v28, %v2274_v19 }
 0x21a   : > { %v2537_v21 = vadd.bf16 %v5482_v31, %v2419_v23  ;;  %v2539_v16 = vadd.bf16 %v5505_v52, %v2421_v53 }
 0x21b   : > { %v2538_v46 = vadd.bf16 %v5485_v20, %v2420_v11  ;;  %v2540_v33 = vadd.bf16 %v5496_v18, %v2422_v49 }
 0x21c   : > { %v2601_v40 = vmax.bf16 %v4542_v2, %v2537_v21  ;;  %v2603_v51 = vmax.bf16 %v4542_v2, %v2539_v16 }
 0x21d   : > { %3115 = vmatmul.mubr.bf16.gmra.mrb[84].mxu1 %v2599_v39  ;;  %v2602_v14 = vmax.bf16 %v4542_v2, %v2538_v46  ;;  %v2604_v3 = vmax.bf16 %v4542_v2, %v2540_v33 }
 0x21f   : > { %2961 = vmatprep.mubr.bf16.mxu0 %v2602_v14  ;;  %3122 = vmatprep.mubr.bf16.mxu1 %v2604_v3 }
 0x220   : > { %2962 = vmatmul.mubr.bf16.gmra.mrb[56].mxu0 %v2601_v40 }
 0x225   : > { %3123 = vmatmul.mubr.bf16.gmra.mrb[88].mxu1 %v2603_v51 }
 0x228   : > { %v2089_v35 = vpop.f32.mrb[12].mxu0  ;;  %v2282_v32 = vpop.f32.mrb[28].mxu1 }
 0x229   : > { %v2091_v34 = vpop.f32.mrb[13].mxu0  ;;  %v2284_v63 = vpop.f32.mrb[29].mxu1 }
 0x22a   : > { %v2093_v27 = vpop.f32.mrb[14].mxu0  ;;  %v2286_v43 = vpop.f32.mrb[30].mxu1 }
 0x22b   : > { %v2423_v54 = vpack.c.bf16 %v2093_v27, %v2089_v35  ;;  %v2425_v50 = vpack.c.bf16 %v2286_v43, %v2282_v32  ;;  %v2095_v55 = vpop.f32.mrb[15].mxu0  ;;  %v2288_v56 = vpop.f32.mrb[31].mxu1 }
 0x22c   : > { %v2424_v59 = vpack.c.bf16 %v2095_v55, %v2091_v34  ;;  %v2426_v61 = vpack.c.bf16 %v2288_v56, %v2284_v63 }
 0x22d   : > { %v2541_v6 = vadd.bf16 %v5482_v31, %v2423_v54  ;;  %v2543_v10 = vadd.bf16 %v5505_v52, %v2425_v50 }
 0x22e   : > { %v2542_v36 = vadd.bf16 %v5485_v20, %v2424_v59  ;;  %v2544_v19 = vadd.bf16 %v5496_v18, %v2426_v61 }
 0x22f   : > { %v2605_v26 = vmax.bf16 %v4542_v2, %v2541_v6  ;;  %v2607_v23 = vmax.bf16 %v4542_v2, %v2543_v10 }
 0x230   : > { %v2606_v48 = vmax.bf16 %v4542_v2, %v2542_v36  ;;  %v2608_v22 = vmax.bf16 %v4542_v2, %v2544_v19 }
 0x232   : > { %2969 = vmatprep.mubr.bf16.mxu0 %v2606_v48  ;;  %3130 = vmatprep.mubr.bf16.mxu1 %v2608_v22 }
 0x233   : > { %2970 = vmatmul.mubr.bf16.gmra.mrb[60].mxu0 %v2605_v26  ;;  %3131 = vmatmul.mubr.bf16.gmra.mrb[92].mxu1 %v2607_v23 }
 0x23b   : > { %v2099_v53 = vpop.f32.mrb[16].mxu0  ;;  %v2292_v30 = vpop.f32.mrb[32].mxu1 }
 0x23c   : > { %v2101_v28 = vpop.f32.mrb[17].mxu0  ;;  %v2294_v11 = vpop.f32.mrb[33].mxu1 }
 0x23d   : > { %v2103_v49 = vpop.f32.mrb[18].mxu0  ;;  %v2296_v21 = vpop.f32.mrb[34].mxu1 }
 0x23e   : > { %v2427_v46 = vpack.c.bf16 %v2103_v49, %v2099_v53  ;;  %v2429_v33 = vpack.c.bf16 %v2296_v21, %v2292_v30  ;;  %v2105_v39 = vpop.f32.mrb[19].mxu0  ;;  %v2298_v14 = vpop.f32.mrb[35].mxu1 }
 0x23f   : > { %v2428_v3 = vpack.c.bf16 %v2105_v39, %v2101_v28  ;;  %v2430_v40 = vpack.c.bf16 %v2298_v14, %v2294_v11  ;;  %v4434_v14 = vld [vmem:[#allocation2 + $0x8] sm:$0xff]  }
 0x240   : > { %v2545_v16 = vadd.bf16 %v5482_v31, %v2427_v46  ;;  %v2547_v51 = vadd.bf16 %v5505_v52, %v2429_v33  ;;  %v4433_v46 = vld [vmem:[#allocation2] sm:$0xff]  }
 0x241   : > { %v2546_v35 = vadd.bf16 %v5485_v20, %v2428_v3  ;;  %v2548_v32 = vadd.bf16 %v5496_v18, %v2430_v40  ;;  %4176 = vmatprep.subr.bf16.mxu0 %v4433_v46 }
 0x242   : > { %v2609_v27 = vmax.bf16 %v4542_v2, %v2545_v16  ;;  %v2611_v43 = vmax.bf16 %v4542_v2, %v2547_v51  ;;  %4177 = vmatpush3.bf16.msra.mxu0 %v4433_v46 }
 0x243   : > { %v2610_v34 = vmax.bf16 %v4542_v2, %v2546_v35  ;;  %v2612_v63 = vmax.bf16 %v4542_v2, %v2548_v32  ;;  %4178 = vmatprep.subr.bf16.mxu0 %v4434_v14 }
 0x245   : > { %2977 = vmatprep.mubr.bf16.mxu0 %v2610_v34  ;;  %3138 = vmatprep.mubr.bf16.mxu1 %v2612_v63 }
 0x246   : > { %2978 = vmatmul.mubr.bf16.gmra.mrb[64].mxu0 %v2609_v27  ;;  %3139 = vmatmul.mubr.bf16.gmra.mrb[96].mxu1 %v2611_v43 }
 0x247   : > { %4179 = vmatpush3.bf16.msra.mxu0 %v4434_v14 }
 0x24e   : > { %v2109_v54 = vpop.f32.mrb[20].mxu0  ;;  %v2302_v50 = vpop.f32.mrb[36].mxu1 }
 0x24f   : > { %v2111_v55 = vpop.f32.mrb[21].mxu0  ;;  %v2304_v56 = vpop.f32.mrb[37].mxu1 }
 0x250   : > { %v2113_v59 = vpop.f32.mrb[22].mxu0  ;;  %v2306_v61 = vpop.f32.mrb[38].mxu1 }
 0x251   : > { %v2431_v6 = vpack.c.bf16 %v2113_v59, %v2109_v54  ;;  %v2433_v10 = vpack.c.bf16 %v2306_v61, %v2302_v50  ;;  %v2115_v36 = vpop.f32.mrb[23].mxu0  ;;  %v2308_v19 = vpop.f32.mrb[39].mxu1  ;;  %v4435_v54 = vld [vmem:[#allocation2 + $0x10] sm:$0xff]  }
 0x252   : > { %v2432_v48 = vpack.c.bf16 %v2115_v36, %v2111_v55  ;;  %v2434_v22 = vpack.c.bf16 %v2308_v19, %v2304_v56  ;;  %4180 = vmatprep.subr.bf16.mxu0 %v4435_v54 }
 0x253   : > { %v2549_v26 = vadd.bf16 %v5482_v31, %v2431_v6  ;;  %v2551_v23 = vadd.bf16 %v5505_v52, %v2433_v10  ;;  %4181 = vmatpush3.bf16.msra.mxu0 %v4435_v54  ;;  %v4436_v10 = vld [vmem:[#allocation2 + $0x18] sm:$0xff]  }
 0x254   : > { %v2550_v53 = vadd.bf16 %v5485_v20, %v2432_v48  ;;  %v2552_v30 = vadd.bf16 %v5496_v18, %v2434_v22  ;;  %4182 = vmatprep.subr.bf16.mxu0 %v4436_v10  ;;  %v4437_v48 = vld [vmem:[#allocation2 + $0x20] sm:$0xff]   ;;  %v4438_v22 = vld [vmem:[#allocation2 + $0x28] sm:$0xff]  }
 0x255   : > { %v2613_v49 = vmax.bf16 %v4542_v2, %v2549_v26  ;;  %v2615_v21 = vmax.bf16 %v4542_v2, %v2551_v23 }
 0x256   : > { %v2614_v28 = vmax.bf16 %v4542_v2, %v2550_v53  ;;  %v2616_v11 = vmax.bf16 %v4542_v2, %v2552_v30 }
 0x257   : > { %4183 = vmatpush3.bf16.msra.mxu0 %v4436_v10 }
 0x258   : > { %2985 = vmatprep.mubr.bf16.mxu0 %v2614_v28  ;;  %3146 = vmatprep.mubr.bf16.mxu1 %v2616_v11  ;;  %v4439_v28 = vld [vmem:[#allocation2 + $0x30] sm:$0xff]  }
 0x259   : > { %2986 = vmatmul.mubr.bf16.gmra.mrb[68].mxu0 %v2613_v49  ;;  %3147 = vmatmul.mubr.bf16.gmra.mrb[100].mxu1 %v2615_v21 }
 0x25a   : > { %4184 = vmatprep.subr.bf16.mxu0 %v4437_v48 }
 0x25b   : > { %4185 = vmatpush3.bf16.msra.mxu0 %v4437_v48 }
 0x25c   : > { %4186 = vmatprep.subr.bf16.mxu0 %v4438_v22 }
 0x25f   : > { %4187 = vmatpush3.bf16.msra.mxu0 %v4438_v22 }
 0x260   : > { %4188 = vmatprep.subr.bf16.mxu0 %v4439_v28 }
 0x261   : > { %v2119_v33 = vpop.f32.mrb[24].mxu0  ;;  %v2312_v39 = vpop.f32.mrb[40].mxu1 }
 0x262   : > { %v2121_v3 = vpop.f32.mrb[25].mxu0  ;;  %v2314_v40 = vpop.f32.mrb[41].mxu1 }
 0x263   : > { %v2123_v16 = vpop.f32.mrb[26].mxu0  ;;  %v2316_v51 = vpop.f32.mrb[42].mxu1  ;;  %4189 = vmatpush3.bf16.msra.mxu0 %v4439_v28 }
 0x264   : > { %v2435_v35 = vpack.c.bf16 %v2123_v16, %v2119_v33  ;;  %v2437_v32 = vpack.c.bf16 %v2316_v51, %v2312_v39  ;;  %v2125_v34 = vpop.f32.mrb[27].mxu0  ;;  %v2318_v63 = vpop.f32.mrb[43].mxu1  ;;  %v4440_v51 = vld [vmem:[#allocation2 + $0x38] sm:$0xff]  }
 0x265   : > { %v2436_v27 = vpack.c.bf16 %v2125_v34, %v2121_v3  ;;  %v2438_v43 = vpack.c.bf16 %v2318_v63, %v2314_v40  ;;  %4190 = vmatprep.subr.bf16.mxu0 %v4440_v51 }
 0x266   : > { %v2553_v50 = vadd.bf16 %v5482_v31, %v2435_v35  ;;  %v2555_v55 = vadd.bf16 %v5505_v52, %v2437_v32 }
 0x267   : > { %v2554_v56 = vadd.bf16 %v5485_v20, %v2436_v27  ;;  %v2556_v59 = vadd.bf16 %v5496_v18, %v2438_v43  ;;  %4191 = vmatpush3.bf16.msra.mxu0 %v4440_v51 }
 0x268   : > { %v2617_v36 = vmax.bf16 %v4542_v2, %v2553_v50  ;;  %v2619_v19 = vmax.bf16 %v4542_v2, %v2555_v55 }
 0x269   : > { %v2618_v61 = vmax.bf16 %v4542_v2, %v2554_v56  ;;  %v2620_v6 = vmax.bf16 %v4542_v2, %v2556_v59 }
 0x26b   : > { %2993 = vmatprep.mubr.bf16.mxu0 %v2618_v61  ;;  %3154 = vmatprep.mubr.bf16.mxu1 %v2620_v6 }
 0x26c   : > { %2994 = vmatmul.mubr.bf16.gmra.mrb[72].mxu0 %v2617_v36  ;;  %3155 = vmatmul.mubr.bf16.gmra.mrb[104].mxu1 %v2619_v19 }
 0x274   : > { %v2129_v26 = vpop.f32.mrb[28].mxu0  ;;  %v2322_v23 = vpop.f32.mrb[44].mxu1 }
 0x275   : > { %v2131_v53 = vpop.f32.mrb[29].mxu0  ;;  %v2324_v30 = vpop.f32.mrb[45].mxu1 }
 0x276   : > { %v2133_v11 = vpop.f32.mrb[30].mxu0  ;;  %v2326_v49 = vpop.f32.mrb[46].mxu1 }
 0x277   : > { %v2439_v21 = vpack.c.bf16 %v2133_v11, %v2129_v26  ;;  %v2441_v46 = vpack.c.bf16 %v2326_v49, %v2322_v23  ;;  %v2135_v33 = vpop.f32.mrb[31].mxu0  ;;  %v2328_v39 = vpop.f32.mrb[47].mxu1 }
 0x278   : > { %v2440_v14 = vpack.c.bf16 %v2135_v33, %v2131_v53  ;;  %v2442_v3 = vpack.c.bf16 %v2328_v39, %v2324_v30 }
 0x279   : > { %v2557_v40 = vadd.bf16 %v5482_v31, %v2439_v21  ;;  %v2559_v16 = vadd.bf16 %v5505_v52, %v2441_v46 }
 0x27a   : > { %v2558_v35 = vadd.bf16 %v5485_v20, %v2440_v14  ;;  %v2560_v32 = vadd.bf16 %v5496_v18, %v2442_v3 }
 0x27b   : > { %v2621_v27 = vmax.bf16 %v4542_v2, %v2557_v40  ;;  %v2623_v43 = vmax.bf16 %v4542_v2, %v2559_v16 }
 0x27c   : > { %v2622_v34 = vmax.bf16 %v4542_v2, %v2558_v35  ;;  %v2624_v63 = vmax.bf16 %v4542_v2, %v2560_v32 }
 0x27e   : > { %3001 = vmatprep.mubr.bf16.mxu0 %v2622_v34  ;;  %3162 = vmatprep.mubr.bf16.mxu1 %v2624_v63 }
 0x27f   : > { %3002 = vmatmul.mubr.bf16.gmra.mrb[76].mxu0 %v2621_v27  ;;  %3163 = vmatmul.mubr.bf16.gmra.mrb[108].mxu1 %v2623_v43 }
 0x287   : > { %v2139_v54 = vpop.f32.mrb[32].mxu0  ;;  %v2332_v50 = vpop.f32.mrb[48].mxu1 }
 0x288   : > { %v2141_v55 = vpop.f32.mrb[33].mxu0  ;;  %v2334_v56 = vpop.f32.mrb[49].mxu1 }
 0x289   : > { %v2143_v59 = vpop.f32.mrb[34].mxu0  ;;  %v2336_v61 = vpop.f32.mrb[50].mxu1 }
 0x28a   : > { %v2443_v6 = vpack.c.bf16 %v2143_v59, %v2139_v54  ;;  %v2445_v10 = vpack.c.bf16 %v2336_v61, %v2332_v50  ;;  %v2145_v36 = vpop.f32.mrb[35].mxu0  ;;  %v2338_v19 = vpop.f32.mrb[51].mxu1 }
 0x28b   : > { %v2444_v48 = vpack.c.bf16 %v2145_v36, %v2141_v55  ;;  %v2446_v22 = vpack.c.bf16 %v2338_v19, %v2334_v56 }
 0x28c   : > { %v2561_v26 = vadd.bf16 %v5482_v31, %v2443_v6  ;;  %v2563_v23 = vadd.bf16 %v5505_v52, %v2445_v10 }
 0x28d   : > { %v2562_v53 = vadd.bf16 %v5485_v20, %v2444_v48  ;;  %v2564_v30 = vadd.bf16 %v5496_v18, %v2446_v22 }
 0x28e   : > { %v2625_v49 = vmax.bf16 %v4542_v2, %v2561_v26  ;;  %v2627_v21 = vmax.bf16 %v4542_v2, %v2563_v23 }
 0x28f   : > { %v2626_v28 = vmax.bf16 %v4542_v2, %v2562_v53  ;;  %v2628_v11 = vmax.bf16 %v4542_v2, %v2564_v30 }
 0x291   : > { %3009 = vmatprep.mubr.bf16.mxu0 %v2626_v28  ;;  %3170 = vmatprep.mubr.bf16.mxu1 %v2628_v11 }
 0x292   : > { %3010 = vmatmul.mubr.bf16.gmra.mrb[80].mxu0 %v2625_v49  ;;  %3171 = vmatmul.mubr.bf16.gmra.mrb[112].mxu1 %v2627_v21 }
 0x29a   : > { %v2149_v46 = vpop.f32.mrb[36].mxu0  ;;  %v2342_v33 = vpop.f32.mrb[52].mxu1 }
 0x29b   : > { %v2151_v39 = vpop.f32.mrb[37].mxu0  ;;  %v2344_v14 = vpop.f32.mrb[53].mxu1 }
 0x29c   : > { %v2153_v3 = vpop.f32.mrb[38].mxu0  ;;  %v2346_v40 = vpop.f32.mrb[54].mxu1 }
 0x29d   : > { %v2447_v16 = vpack.c.bf16 %v2153_v3, %v2149_v46  ;;  %v2449_v51 = vpack.c.bf16 %v2346_v40, %v2342_v33  ;;  %v2155_v35 = vpop.f32.mrb[39].mxu0  ;;  %v2348_v32 = vpop.f32.mrb[55].mxu1 }
 0x29e   : > { %v2448_v34 = vpack.c.bf16 %v2155_v35, %v2151_v39  ;;  %v2450_v63 = vpack.c.bf16 %v2348_v32, %v2344_v14 }
 0x29f   : > { %v2565_v27 = vadd.bf16 %v5482_v31, %v2447_v16  ;;  %v2567_v43 = vadd.bf16 %v5505_v52, %v2449_v51 }
 0x2a0   : > { %v2566_v54 = vadd.bf16 %v5485_v20, %v2448_v34  ;;  %v2568_v50 = vadd.bf16 %v5496_v18, %v2450_v63 }
 0x2a1   : > { %v2629_v59 = vmax.bf16 %v4542_v2, %v2565_v27  ;;  %v2631_v61 = vmax.bf16 %v4542_v2, %v2567_v43 }
 0x2a2   : > { %v2630_v55 = vmax.bf16 %v4542_v2, %v2566_v54  ;;  %v2632_v56 = vmax.bf16 %v4542_v2, %v2568_v50 }
 0x2a4   : > { %3017 = vmatprep.mubr.bf16.mxu0 %v2630_v55  ;;  %3178 = vmatprep.mubr.bf16.mxu1 %v2632_v56 }
 0x2a5   : > { %3018 = vmatmul.mubr.bf16.gmra.mrb[84].mxu0 %v2629_v59  ;;  %3179 = vmatmul.mubr.bf16.gmra.mrb[116].mxu1 %v2631_v61 }
 0x2ad   : > { %v2159_v6 = vpop.f32.mrb[40].mxu0  ;;  %v2352_v10 = vpop.f32.mrb[56].mxu1 }
 0x2ae   : > { %v2161_v36 = vpop.f32.mrb[41].mxu0  ;;  %v2354_v19 = vpop.f32.mrb[57].mxu1 }
 0x2af   : > { %v2163_v48 = vpop.f32.mrb[42].mxu0  ;;  %v2356_v22 = vpop.f32.mrb[58].mxu1 }
 0x2b0   : > { %v2451_v26 = vpack.c.bf16 %v2163_v48, %v2159_v6  ;;  %v2453_v23 = vpack.c.bf16 %v2356_v22, %v2352_v10  ;;  %v2165_v53 = vpop.f32.mrb[43].mxu0  ;;  %v2358_v30 = vpop.f32.mrb[59].mxu1  ;;  %v2578_v6 = vadd.bf16 %v5485_v20, %v2460_v1 }
 0x2b1   : > { %v2452_v28 = vpack.c.bf16 %v2165_v53, %v2161_v36  ;;  %v2454_v11 = vpack.c.bf16 %v2358_v30, %v2354_v19 }
 0x2b2   : > { %v2569_v49 = vadd.bf16 %v5482_v31, %v2451_v26  ;;  %v2571_v21 = vadd.bf16 %v5505_v52, %v2453_v23  ;;  %v2642_v62 = vmax.bf16 %v4542_v2, %v2578_v6 }
 0x2b3   : > { %v2570_v46 = vadd.bf16 %v5485_v20, %v2452_v28  ;;  %v2572_v33 = vadd.bf16 %v5496_v18, %v2454_v11  ;;  %v2577_v11 = vadd.bf16 %v5482_v31, %v2459_v17 }
 0x2b4   : > { %v2633_v3 = vmax.bf16 %v4542_v2, %v2569_v49  ;;  %v2635_v40 = vmax.bf16 %v4542_v2, %v2571_v21 }
 0x2b5   : > { %v2634_v39 = vmax.bf16 %v4542_v2, %v2570_v46  ;;  %v2636_v14 = vmax.bf16 %v4542_v2, %v2572_v33  ;;  %v2582_v46 = vadd.bf16 %v5485_v20, %v2464_v41 }
 0x2b7   : > { %3025 = vmatprep.mubr.bf16.mxu0 %v2634_v39  ;;  %3186 = vmatprep.mubr.bf16.mxu1 %v2636_v14  ;;  %v2646_v9 = vmax.bf16 %v4542_v2, %v2582_v46 }
 0x2b8   : > { %3026 = vmatmul.mubr.bf16.gmra.mrb[88].mxu0 %v2633_v3  ;;  %3187 = vmatmul.mubr.bf16.gmra.mrb[120].mxu1 %v2635_v40 }
 0x2c0   : > { %v2169_v16 = vpop.f32.mrb[44].mxu0  ;;  %v2362_v51 = vpop.f32.mrb[60].mxu1 }
 0x2c1   : > { %v2171_v35 = vpop.f32.mrb[45].mxu0  ;;  %v2364_v32 = vpop.f32.mrb[61].mxu1 }
 0x2c2   : > { %v2173_v34 = vpop.f32.mrb[46].mxu0  ;;  %v2366_v63 = vpop.f32.mrb[62].mxu1 }
 0x2c3   : > { %v2455_v27 = vpack.c.bf16 %v2173_v34, %v2169_v16  ;;  %v2457_v43 = vpack.c.bf16 %v2366_v63, %v2362_v51  ;;  %v2175_v54 = vpop.f32.mrb[47].mxu0  ;;  %v2368_v50 = vpop.f32.mrb[63].mxu1  ;;  %v2641_v51 = vmax.bf16 %v4542_v2, %v2577_v11  ;;  %v2581_v63 = vadd.bf16 %v5482_v31, %v2463_v25 }
 0x2c4   : > { %v2456_v55 = vpack.c.bf16 %v2175_v54, %v2171_v35  ;;  %v2458_v56 = vpack.c.bf16 %v2368_v50, %v2364_v32 }
 0x2c5   : > { %v2573_v59 = vadd.bf16 %v5482_v31, %v2455_v27  ;;  %v2575_v61 = vadd.bf16 %v5505_v52, %v2457_v43  ;;  %v2586_v43 = vadd.bf16 %v5485_v20, %v2468_v38 }
 0x2c6   : > { %v2574_v10 = vadd.bf16 %v5485_v20, %v2456_v55  ;;  %v2576_v36 = vadd.bf16 %v5496_v18, %v2458_v56 }
 0x2c7   : > { %v2637_v23 = vmax.bf16 %v4542_v2, %v2573_v59  ;;  %v2639_v53 = vmax.bf16 %v4542_v2, %v2575_v61  ;;  %v2645_v59 = vmax.bf16 %v4542_v2, %v2581_v63  ;;  %v2650_v24 = vmax.bf16 %v4542_v2, %v2586_v43 }
 0x2c8   : > { %v2372_v19 = vpop.f32.mrb[64].mxu1  ;;  %v2638_v48 = vmax.bf16 %v4542_v2, %v2574_v10  ;;  %v2640_v22 = vmax.bf16 %v4542_v2, %v2576_v36  ;;  %v2590_v10 = vadd.bf16 %v5485_v20, %v2472_v13 }
 0x2c9   : > { %v2374_v26 = vpop.f32.mrb[65].mxu1 }
 0x2ca   : > { %v2376_v30 = vpop.f32.mrb[66].mxu1  ;;  %3033 = vmatprep.mubr.bf16.mxu0 %v2638_v48  ;;  %3194 = vmatprep.mubr.bf16.mxu1 %v2640_v22  ;;  %v2654_v45 = vmax.bf16 %v4542_v2, %v2590_v10 }
 0x2cb   : > { %v2461_v7 = vpack.c.bf16 %v2376_v30, %v2372_v19  ;;  %v2378_v1 = vpop.f32.mrb[67].mxu1  ;;  %3034 = vmatmul.mubr.bf16.gmra.mrb[92].mxu0 %v2637_v23  ;;  %3195 = vmatmul.mubr.bf16.gmra.mrb[124].mxu1 %v2639_v53  ;;  %v2649_v53 = vmax.bf16 %v4542_v2, %v2585_v15 }
 0x2cc   : > { %v2462_v28 = vpack.c.bf16 %v2378_v1, %v2374_v26  ;;  %3041 = vmatprep.mubr.bf16.mxu0 %v2642_v62  ;;  %v2589_v1 = vadd.bf16 %v5482_v31, %v2471_v12 }
 0x2cd   : > { %v2579_v49 = vadd.bf16 %v5505_v52, %v2461_v7  ;;  %v3944_v21 = vpop.f32.mrb[48].mxu0 }
 0x2ce   : > { %v2580_v33 = vadd.bf16 %v5496_v18, %v2462_v28  ;;  %v3945_v39 = vpop.f32.mrb[49].mxu0 }
 0x2cf   : > { %v5611_v14 = vadd.f32 %v3945_v39, %v3944_v21  ;;  %v3947_v3 = vpop.f32.mrb[50].mxu0  ;;  %v2643_v35 = vmax.bf16 %v4542_v2, %v2579_v49  ;;  %v3251_v49 = vld [vmem:[%s5813_s6] sm:$0x1]  ;;  %v2653_v39 = vmax.bf16 %v4542_v2, %v2589_v1 }
 0x2d0   : > { %v2382_v40 = vpop.f32.mrb[68].mxu1  ;;  %v3948_v16 = vpop.f32.mrb[51].mxu0  ;;  %v2644_v60 = vmax.bf16 %v4542_v2, %v2580_v33  ;;  %v3253_v5 = vpack.i.b16 %v3251_v49, %v3251_v49 }
 0x2d1   : > { %v5614_v4 = vadd.f32 %v3948_v16, %v3947_v3  ;;  %v2384_v17 = vpop.f32.mrb[69].mxu1 }
 0x2d2   : > { %v2386_v0 = vpop.f32.mrb[70].mxu1  ;;  %3202 = vmatprep.mubr.bf16.mxu1 %v2644_v60  ;;  %v5662_v16 = vrot.slane %v3253_v5, %v4858_v57 }
 0x2d3   : > { %v2465_v41 = vpack.c.bf16 %v2386_v0, %v2382_v40  ;;  %v2388_v32 = vpop.f32.mrb[71].mxu1  ;;  %3042 = vmatmul.mubr.bf16.gmra.mrb[96].mxu0 %v2641_v51  ;;  %3203 = vmatmul.mubr.bf16.gmra.mrb[128].mxu1 %v2643_v35 }
 0x2d4   : > { %v2466_v34 = vpack.c.bf16 %v2388_v32, %v2384_v17  ;;  %3049 = vmatprep.mubr.bf16.mxu0 %v2646_v9 }
 0x2d5   : > { %v2583_v27 = vadd.bf16 %v5505_v52, %v2465_v41 }
 0x2d6   : > { %v2584_v54 = vadd.bf16 %v5496_v18, %v2466_v34 }
 0x2d7   : > { %v2647_v61 = vmax.bf16 %v4542_v2, %v2583_v27 }
 0x2d8   : > { %v2392_v50 = vpop.f32.mrb[72].mxu1  ;;  %v2648_v55 = vmax.bf16 %v4542_v2, %v2584_v54 }
 0x2d9   : > { %v2394_v56 = vpop.f32.mrb[73].mxu1 }
 0x2da   : > { %v2396_v44 = vpop.f32.mrb[74].mxu1  ;;  %3210 = vmatprep.mubr.bf16.mxu1 %v2648_v55 }
 0x2db   : > { %v2469_v25 = vpack.c.bf16 %v2396_v44, %v2392_v50  ;;  %v2398_v6 = vpop.f32.mrb[75].mxu1  ;;  %3050 = vmatmul.mubr.bf16.gmra.mrb[100].mxu0 %v2645_v59  ;;  %3211 = vmatmul.mubr.bf16.gmra.mrb[132].mxu1 %v2647_v61 }
 0x2dc   : > { %v2470_v47 = vpack.c.bf16 %v2398_v6, %v2394_v56  ;;  %3057 = vmatprep.mubr.bf16.mxu0 %v2650_v24 }
 0x2dd   : > { %v2587_v38 = vadd.bf16 %v5505_v52, %v2469_v25 }
 0x2de   : > { %v2588_v36 = vadd.bf16 %v5496_v18, %v2470_v47 }
 0x2df   : > { %v2651_v8 = vmax.bf16 %v4542_v2, %v2587_v38 }
 0x2e0   : > { %v2402_v19 = vpop.f32.mrb[76].mxu1  ;;  %v3950_v48 = vpop.f32.mrb[52].mxu0  ;;  %v2652_v22 = vmax.bf16 %v4542_v2, %v2588_v36 }
 0x2e1   : > { %v2404_v26 = vpop.f32.mrb[77].mxu1  ;;  %v3951_v23 = vpop.f32.mrb[53].mxu0 }
 0x2e2   : > { %v3952_v42 = vadd.f32 %v3951_v23, %v3950_v48  ;;  %v2406_v37 = vpop.f32.mrb[78].mxu1  ;;  %v3953_v30 = vpop.f32.mrb[54].mxu0  ;;  %3218 = vmatprep.mubr.bf16.mxu1 %v2652_v22 }
 0x2e3   : > { %v2473_v29 = vpack.c.bf16 %v2406_v37, %v2402_v19  ;;  %v2408_v13 = vpop.f32.mrb[79].mxu1  ;;  %v3954_v20 = vpop.f32.mrb[55].mxu0  ;;  %3058 = vmatmul.mubr.bf16.gmra.mrb[104].mxu0 %v2649_v53  ;;  %3219 = vmatmul.mubr.bf16.gmra.mrb[136].mxu1 %v2651_v8 }
 0x2e4   : > { %v2474_v62 = vpack.c.bf16 %v2408_v13, %v2404_v26  ;;  %v3955_v7 = vadd.f32 %v3954_v20, %v3953_v30  ;;  %3065 = vmatprep.mubr.bf16.mxu0 %v2654_v45 }
 0x2e5   : > { %v2591_v28 = vadd.bf16 %v5505_v52, %v2473_v29 }
 0x2e6   : > { %v2592_v11 = vadd.bf16 %v5496_v18, %v2474_v62 }
 0x2e7   : > { %v2655_v3 = vmax.bf16 %v4542_v2, %v2591_v28 }
 0x2e8   : > { %v4056_v21 = vpop.f32.mrb[80].mxu1  ;;  %v2656_v46 = vmax.bf16 %v4542_v2, %v2592_v11 }
 0x2e9   : > { %v4057_v33 = vpop.f32.mrb[81].mxu1 }
 0x2ea   : > { %v4058_v40 = vadd.f32 %v4057_v33, %v4056_v21  ;;  %v4059_v58 = vpop.f32.mrb[82].mxu1  ;;  %3226 = vmatprep.mubr.bf16.mxu1 %v2656_v46 }
 0x2eb   : > { %3066 = vmatmul.mubr.bf16.gmra.mrb[108].mxu0 %v2653_v39  ;;  %v4060_v12 = vpop.f32.mrb[83].mxu1  ;;  %3227 = vmatmul.mubr.bf16.gmra.mrb[140].mxu1 %v2655_v3 }
 0x2ec   : > { %v3109_v31 = vadd.f32 %v4058_v40, %v5611_v14  ;;  %v4061_v18 = vadd.f32 %v4060_v12, %v4059_v58 }
 0x2ee   : > { %v3112_v52 = vadd.f32 %v4061_v18, %v5614_v4 }
 0x2f0   : > { %v3235_v60 = vpack.c.bf16 %v3112_v52, %v3109_v31  ;;  %v4062_v17 = vpop.f32.mrb[84].mxu1 }
 0x2f1   : > { %v4063_v51 = vpop.f32.mrb[85].mxu1 }
 0x2f2   : > { %v4064_v35 = vadd.f32 %v4063_v51, %v4062_v17  ;;  %v4065_v0 = vpop.f32.mrb[86].mxu1  ;;  %v3259_v9 = vadd.bf16 %v5662_v16, %v3235_v60 }
 0x2f3   : > { %v3956_v41 = vpop.f32.mrb[56].mxu0  ;;  %v4066_v32 = vpop.f32.mrb[87].mxu1 }
 0x2f4   : > { %v3117_v34 = vadd.f32 %v4064_v35, %v3952_v42  ;;  %v4067_v63 = vadd.f32 %v4066_v32, %v4065_v0  ;;  %v3957_v27 = vpop.f32.mrb[57].mxu0  ;;  %v3275_v14 = vmax.bf16 %v4542_v2, %v3259_v9 }
 0x2f5   : > { %v3958_v43 = vadd.f32 %v3957_v27, %v3956_v41  ;;  %v3959_v54 = vpop.f32.mrb[58].mxu0 }
 0x2f6   : > { %v3120_v4 = vadd.f32 %v4067_v63, %v3955_v7  ;;  %v3960_v50 = vpop.f32.mrb[59].mxu0  ;;  %4192 = vmatprep.mubr.bf16.mxu0 %v3275_v14 }
 0x2f7   : > { %v3961_v55 = vadd.f32 %v3960_v50, %v3959_v54 }
 0x2f8   : > { %v3236_v56 = vpack.c.bf16 %v3120_v4, %v3117_v34  ;;  %v4068_v59 = vpop.f32.mrb[88].mxu1 }
 0x2f9   : > { %v4069_v61 = vpop.f32.mrb[89].mxu1 }
 0x2fa   : > { %v3260_v44 = vadd.bf16 %v5662_v16, %v3236_v56  ;;  %v4070_v24 = vadd.f32 %v4069_v61, %v4068_v59  ;;  %v4071_v25 = vpop.f32.mrb[90].mxu1 }
 0x2fb   : > { %v4072_v6 = vpop.f32.mrb[91].mxu1 }
 0x2fc   : > { %v3276_v47 = vmax.bf16 %v4542_v2, %v3260_v44  ;;  %v3125_v15 = vadd.f32 %v4070_v24, %v3958_v43  ;;  %v4073_v38 = vadd.f32 %v4072_v6, %v4071_v25 }
 0x2fe   : > { %v3128_v10 = vadd.f32 %v4073_v38, %v3961_v55  ;;  %4193 = vmatmul.mubr.bf16.vlgmr.msra.gmra.mrb[112].mxu0 %v3276_v47 }
 0x300   : > { %v3237_v36 = vpack.c.bf16 %v3128_v10, %v3125_v15 }
 0x302   : > { %v3261_v19 = vadd.bf16 %v5662_v16, %v3237_v36 }
 0x304   : > { %v3277_v48 = vmax.bf16 %v4542_v2, %v3261_v19 }
 0x306   : > { %v3962_v22 = vpop.f32.mrb[60].mxu0  ;;  %v4074_v26 = vpop.f32.mrb[92].mxu1  ;;  %4196 = vmatprep.mubr.bf16.mxu0 %v3277_v48 }
 0x307   : > { %v3963_v23 = vpop.f32.mrb[61].mxu0  ;;  %v4075_v53 = vpop.f32.mrb[93].mxu1 }
 0x308   : > { %v3964_v8 = vadd.f32 %v3963_v23, %v3962_v22  ;;  %v4076_v42 = vadd.f32 %v4075_v53, %v4074_v26  ;;  %v3965_v37 = vpop.f32.mrb[62].mxu0  ;;  %v4077_v30 = vpop.f32.mrb[94].mxu1 }
 0x309   : > { %v3966_v45 = vpop.f32.mrb[63].mxu0  ;;  %v4078_v29 = vpop.f32.mrb[95].mxu1 }
 0x30a   : > { %v3133_v13 = vadd.f32 %v4076_v42, %v3964_v8  ;;  %v3967_v20 = vadd.f32 %v3966_v45, %v3965_v37  ;;  %v4079_v62 = vadd.f32 %v4078_v29, %v4077_v30 }
 0x30c   : > { %v3136_v7 = vadd.f32 %v4079_v62, %v3967_v20 }
 0x30e   : > { %v3238_v1 = vpack.c.bf16 %v3136_v7, %v3133_v13 }
 0x310   : > { %v3262_v28 = vadd.bf16 %v5662_v16, %v3238_v1 }
 0x312   : > { %v3278_v11 = vmax.bf16 %v4542_v2, %v3262_v28 }
 0x314   : > { %4197 = vmatmul.mubr.bf16.gmra.mrb[116].mxu0 %v3278_v11 }
 0x319   : > { %v3968_v49 = vpop.f32.mrb[64].mxu0  ;;  %v4080_v21 = vpop.f32.mrb[96].mxu1 }
 0x31a   : > { %v3969_v46 = vpop.f32.mrb[65].mxu0  ;;  %v4081_v33 = vpop.f32.mrb[97].mxu1 }
 0x31b   : > { %v3970_v39 = vadd.f32 %v3969_v46, %v3968_v49  ;;  %v4082_v3 = vadd.f32 %v4081_v33, %v4080_v21  ;;  %v3971_v40 = vpop.f32.mrb[66].mxu0  ;;  %v4083_v58 = vpop.f32.mrb[98].mxu1 }
 0x31c   : > { %v3972_v5 = vpop.f32.mrb[67].mxu0  ;;  %v4084_v12 = vpop.f32.mrb[99].mxu1 }
 0x31d   : > { %v3141_v31 = vadd.f32 %v4082_v3, %v3970_v39  ;;  %v3973_v18 = vadd.f32 %v3972_v5, %v3971_v40  ;;  %v4085_v52 = vadd.f32 %v4084_v12, %v4083_v58 }
 0x31f   : > { %v3144_v60 = vadd.f32 %v4085_v52, %v3973_v18 }
 0x321   : > { %v3239_v17 = vpack.c.bf16 %v3144_v60, %v3141_v31 }
 0x323   : > { %v3263_v51 = vadd.bf16 %v5662_v16, %v3239_v17 }
 0x325   : > { %v3279_v35 = vmax.bf16 %v4542_v2, %v3263_v51 }
 0x327   : > { %4200 = vmatprep.mubr.bf16.mxu0 %v3279_v35 }
 0x32c   : > { %v3974_v0 = vpop.f32.mrb[68].mxu0  ;;  %v4086_v9 = vpop.f32.mrb[100].mxu1 }
 0x32d   : > { %v3975_v41 = vpop.f32.mrb[69].mxu0  ;;  %v4087_v32 = vpop.f32.mrb[101].mxu1 }
 0x32e   : > { %v3976_v34 = vadd.f32 %v3975_v41, %v3974_v0  ;;  %v4088_v63 = vadd.f32 %v4087_v32, %v4086_v9  ;;  %v3977_v27 = vpop.f32.mrb[70].mxu0  ;;  %v4089_v14 = vpop.f32.mrb[102].mxu1 }
 0x32f   : > { %v3978_v43 = vpop.f32.mrb[71].mxu0  ;;  %v4090_v54 = vpop.f32.mrb[103].mxu1 }
 0x330   : > { %v3149_v4 = vadd.f32 %v4088_v63, %v3976_v34  ;;  %v3979_v50 = vadd.f32 %v3978_v43, %v3977_v27  ;;  %v4091_v55 = vadd.f32 %v4090_v54, %v4089_v14 }
 0x332   : > { %v3152_v56 = vadd.f32 %v4091_v55, %v3979_v50 }
 0x334   : > { %v3240_v59 = vpack.c.bf16 %v3152_v56, %v3149_v4 }
 0x336   : > { %v3264_v61 = vadd.bf16 %v5662_v16, %v3240_v59 }
 0x338   : > { %v3280_v44 = vmax.bf16 %v4542_v2, %v3264_v61 }
 0x33a   : > { %4201 = vmatmul.mubr.bf16.gmra.mrb[120].mxu0 %v3280_v44 }
 0x33f   : > { %v3980_v24 = vpop.f32.mrb[72].mxu0  ;;  %v4092_v25 = vpop.f32.mrb[104].mxu1 }
 0x340   : > { %v3981_v6 = vpop.f32.mrb[73].mxu0  ;;  %v4093_v47 = vpop.f32.mrb[105].mxu1 }
 0x341   : > { %v3982_v15 = vadd.f32 %v3981_v6, %v3980_v24  ;;  %v4094_v38 = vadd.f32 %v4093_v47, %v4092_v25  ;;  %v3983_v10 = vpop.f32.mrb[74].mxu0  ;;  %v4095_v36 = vpop.f32.mrb[106].mxu1 }
 0x342   : > { %v3984_v19 = vpop.f32.mrb[75].mxu0  ;;  %v4096_v48 = vpop.f32.mrb[107].mxu1 }
 0x343   : > { %v3157_v22 = vadd.f32 %v4094_v38, %v3982_v15  ;;  %v3985_v26 = vadd.f32 %v3984_v19, %v3983_v10  ;;  %v4097_v23 = vadd.f32 %v4096_v48, %v4095_v36 }
 0x345   : > { %v3160_v53 = vadd.f32 %v4097_v23, %v3985_v26 }
 0x347   : > { %v3241_v8 = vpack.c.bf16 %v3160_v53, %v3157_v22 }
 0x349   : > { %v3265_v42 = vadd.bf16 %v5662_v16, %v3241_v8 }
 0x34b   : > { %v3281_v37 = vmax.bf16 %v4542_v2, %v3265_v42 }
 0x34d   : > { %4204 = vmatprep.mubr.bf16.mxu0 %v3281_v37 }
 0x352   : > { %v3986_v30 = vpop.f32.mrb[76].mxu0  ;;  %v4098_v45 = vpop.f32.mrb[108].mxu1 }
 0x353   : > { %v3987_v29 = vpop.f32.mrb[77].mxu0  ;;  %v4099_v13 = vpop.f32.mrb[109].mxu1 }
 0x354   : > { %v3988_v20 = vadd.f32 %v3987_v29, %v3986_v30  ;;  %v4100_v62 = vadd.f32 %v4099_v13, %v4098_v45  ;;  %v3989_v7 = vpop.f32.mrb[78].mxu0  ;;  %v4101_v1 = vpop.f32.mrb[110].mxu1 }
 0x355   : > { %v3990_v28 = vpop.f32.mrb[79].mxu0  ;;  %v4102_v11 = vpop.f32.mrb[111].mxu1 }
 0x356   : > { %v3165_v49 = vadd.f32 %v4100_v62, %v3988_v20  ;;  %v3991_v21 = vadd.f32 %v3990_v28, %v3989_v7  ;;  %v4103_v46 = vadd.f32 %v4102_v11, %v4101_v1 }
 0x358   : > { %v3168_v33 = vadd.f32 %v4103_v46, %v3991_v21 }
 0x35a   : > { %v3242_v39 = vpack.c.bf16 %v3168_v33, %v3165_v49 }
 0x35c   : > { %v3266_v3 = vadd.bf16 %v5662_v16, %v3242_v39 }
 0x35e   : > { %v3282_v40 = vmax.bf16 %v4542_v2, %v3266_v3 }
 0x360   : > { %4205 = vmatmul.mubr.bf16.gmra.mrb[124].mxu0 %v3282_v40 }
 0x365   : > { %v3992_v58 = vpop.f32.mrb[80].mxu0  ;;  %v4104_v5 = vpop.f32.mrb[112].mxu1 }
 0x366   : > { %v3993_v12 = vpop.f32.mrb[81].mxu0  ;;  %v4105_v31 = vpop.f32.mrb[113].mxu1 }
 0x367   : > { %v3994_v18 = vadd.f32 %v3993_v12, %v3992_v58  ;;  %v4106_v52 = vadd.f32 %v4105_v31, %v4104_v5  ;;  %v3995_v60 = vpop.f32.mrb[82].mxu0  ;;  %v4107_v17 = vpop.f32.mrb[114].mxu1 }
 0x368   : > { %v3996_v51 = vpop.f32.mrb[83].mxu0  ;;  %v4108_v35 = vpop.f32.mrb[115].mxu1 }
 0x369   : > { %v3173_v0 = vadd.f32 %v4106_v52, %v3994_v18  ;;  %v3997_v9 = vadd.f32 %v3996_v51, %v3995_v60  ;;  %v4109_v41 = vadd.f32 %v4108_v35, %v4107_v17 }
 0x36b   : > { %v3176_v32 = vadd.f32 %v4109_v41, %v3997_v9 }
 0x36d   : > { %v3243_v34 = vpack.c.bf16 %v3176_v32, %v3173_v0 }
 0x36f   : > { %v3267_v63 = vadd.bf16 %v5662_v16, %v3243_v34 }
 0x371   : > { %v3283_v27 = vmax.bf16 %v4542_v2, %v3267_v63 }
 0x373   : > { %4208 = vmatprep.mubr.bf16.mxu0 %v3283_v27 }
 0x378   : > { %v3998_v14 = vpop.f32.mrb[84].mxu0  ;;  %v4110_v43 = vpop.f32.mrb[116].mxu1 }
 0x379   : > { %v3999_v54 = vpop.f32.mrb[85].mxu0  ;;  %v4111_v4 = vpop.f32.mrb[117].mxu1 }
 0x37a   : > { %v4000_v50 = vadd.f32 %v3999_v54, %v3998_v14  ;;  %v4112_v55 = vadd.f32 %v4111_v4, %v4110_v43  ;;  %v4001_v56 = vpop.f32.mrb[86].mxu0  ;;  %v4113_v59 = vpop.f32.mrb[118].mxu1 }
 0x37b   : > { %v4002_v61 = vpop.f32.mrb[87].mxu0  ;;  %v4114_v44 = vpop.f32.mrb[119].mxu1 }
 0x37c   : > { %v3181_v24 = vadd.f32 %v4112_v55, %v4000_v50  ;;  %v4003_v25 = vadd.f32 %v4002_v61, %v4001_v56  ;;  %v4115_v6 = vadd.f32 %v4114_v44, %v4113_v59 }
 0x37e   : > { %v3184_v47 = vadd.f32 %v4115_v6, %v4003_v25 }
 0x380   : > { %v3244_v15 = vpack.c.bf16 %v3184_v47, %v3181_v24 }
 0x382   : > { %v3268_v38 = vadd.bf16 %v5662_v16, %v3244_v15 }
 0x384   : > { %v3284_v10 = vmax.bf16 %v4542_v2, %v3268_v38 }
 0x386   : > { %4209 = vmatmul.mubr.bf16.gmra.mrb[128].mxu0 %v3284_v10 }
 0x38b   : > { %v4004_v36 = vpop.f32.mrb[88].mxu0  ;;  %v4116_v19 = vpop.f32.mrb[120].mxu1 }
 0x38c   : > { %v4005_v48 = vpop.f32.mrb[89].mxu0  ;;  %v4117_v22 = vpop.f32.mrb[121].mxu1 }
 0x38d   : > { %v4006_v26 = vadd.f32 %v4005_v48, %v4004_v36  ;;  %v4118_v23 = vadd.f32 %v4117_v22, %v4116_v19  ;;  %v4007_v53 = vpop.f32.mrb[90].mxu0  ;;  %v4119_v8 = vpop.f32.mrb[122].mxu1 }
 0x38e   : > { %v4008_v42 = vpop.f32.mrb[91].mxu0  ;;  %v4120_v37 = vpop.f32.mrb[123].mxu1 }
 0x38f   : > { %v3189_v30 = vadd.f32 %v4118_v23, %v4006_v26  ;;  %v4009_v45 = vadd.f32 %v4008_v42, %v4007_v53  ;;  %v4121_v29 = vadd.f32 %v4120_v37, %v4119_v8 }
 0x391   : > { %v3192_v13 = vadd.f32 %v4121_v29, %v4009_v45 }
 0x393   : > { %v3245_v20 = vpack.c.bf16 %v3192_v13, %v3189_v30 }
 0x395   : > { %v3269_v62 = vadd.bf16 %v5662_v16, %v3245_v20 }
 0x397   : > { %v3285_v7 = vmax.bf16 %v4542_v2, %v3269_v62 }
 0x399   : > { %4212 = vmatprep.mubr.bf16.mxu0 %v3285_v7 }
 0x39e   : > { %v4010_v1 = vpop.f32.mrb[92].mxu0  ;;  %v4122_v28 = vpop.f32.mrb[124].mxu1 }
 0x39f   : > { %v4011_v11 = vpop.f32.mrb[93].mxu0  ;;  %v4123_v49 = vpop.f32.mrb[125].mxu1 }
 0x3a0   : > { %v4012_v21 = vadd.f32 %v4011_v11, %v4010_v1  ;;  %v4124_v46 = vadd.f32 %v4123_v49, %v4122_v28  ;;  %v4013_v33 = vpop.f32.mrb[94].mxu0  ;;  %v4125_v39 = vpop.f32.mrb[126].mxu1 }
 0x3a1   : > { %v4014_v3 = vpop.f32.mrb[95].mxu0  ;;  %v4126_v40 = vpop.f32.mrb[127].mxu1 }
 0x3a2   : > { %v3197_v58 = vadd.f32 %v4124_v46, %v4012_v21  ;;  %v4015_v5 = vadd.f32 %v4014_v3, %v4013_v33  ;;  %v4127_v12 = vadd.f32 %v4126_v40, %v4125_v39 }
 0x3a4   : > { %v3200_v31 = vadd.f32 %v4127_v12, %v4015_v5 }
 0x3a6   : > { %v3246_v18 = vpack.c.bf16 %v3200_v31, %v3197_v58  ;;  %v4016_v52 = vpop.f32.mrb[96].mxu0  ;;  %v4128_v60 = vpop.f32.mrb[128].mxu1 }
 0x3a7   : > { %v4017_v17 = vpop.f32.mrb[97].mxu0  ;;  %v4129_v51 = vpop.f32.mrb[129].mxu1 }
 0x3a8   : > { %v4018_v35 = vadd.f32 %v4017_v17, %v4016_v52  ;;  %v4130_v0 = vadd.f32 %v4129_v51, %v4128_v60  ;;  %v4019_v9 = vpop.f32.mrb[98].mxu0  ;;  %v4131_v41 = vpop.f32.mrb[130].mxu1  ;;  %v3270_v32 = vadd.bf16 %v5662_v16, %v3246_v18 }
 0x3a9   : > { %v4020_v34 = vpop.f32.mrb[99].mxu0  ;;  %v4132_v63 = vpop.f32.mrb[131].mxu1 }
 0x3aa   : > { %v3205_v27 = vadd.f32 %v4130_v0, %v4018_v35  ;;  %v4021_v14 = vadd.f32 %v4020_v34, %v4019_v9  ;;  %v4133_v43 = vadd.f32 %v4132_v63, %v4131_v41  ;;  %v3286_v54 = vmax.bf16 %v4542_v2, %v3270_v32  ;;  %v3532_v34 = vld [vmem:[%s5815_s8] sm:$0x1] }
 0x3ab   : > { %v3534_v63 = vpack.i.b16 %v3532_v34, %v3532_v34 }
 0x3ac   : > { %v3208_v4 = vadd.f32 %v4133_v43, %v4021_v14  ;;  %4213 = vmatmul.mubr.bf16.gmra.mrb[132].mxu0 %v3286_v54 }
 0x3ad   : > { %v5701_v43 = vrot.slane %v3534_v63, %v4858_v57 }
 0x3ae   : > { %v3247_v50 = vpack.c.bf16 %v3208_v4, %v3205_v27  ;;  %v4022_v55 = vpop.f32.mrb[100].mxu0  ;;  %v4134_v56 = vpop.f32.mrb[132].mxu1 }
 0x3af   : > { %v4023_v59 = vpop.f32.mrb[101].mxu0  ;;  %v4135_v61 = vpop.f32.mrb[133].mxu1 }
 0x3b0   : > { %v4024_v44 = vadd.f32 %v4023_v59, %v4022_v55  ;;  %v4136_v24 = vadd.f32 %v4135_v61, %v4134_v56  ;;  %v4025_v25 = vpop.f32.mrb[102].mxu0  ;;  %v4137_v6 = vpop.f32.mrb[134].mxu1  ;;  %v3271_v47 = vadd.bf16 %v5662_v16, %v3247_v50 }
 0x3b1   : > { %v4026_v15 = vpop.f32.mrb[103].mxu0  ;;  %v4138_v38 = vpop.f32.mrb[135].mxu1 }
 0x3b2   : > { %v3213_v10 = vadd.f32 %v4136_v24, %v4024_v44  ;;  %v4027_v36 = vadd.f32 %v4026_v15, %v4025_v25  ;;  %v4139_v19 = vadd.f32 %v4138_v38, %v4137_v6  ;;  %v3287_v48 = vmax.bf16 %v4542_v2, %v3271_v47 }
 0x3b4   : > { %v3216_v22 = vadd.f32 %v4139_v19, %v4027_v36  ;;  %4216 = vmatprep.mubr.bf16.mxu0 %v3287_v48 }
 0x3b6   : > { %v3248_v26 = vpack.c.bf16 %v3216_v22, %v3213_v10  ;;  %v4028_v23 = vpop.f32.mrb[104].mxu0  ;;  %v4140_v53 = vpop.f32.mrb[136].mxu1 }
 0x3b7   : > { %v4029_v8 = vpop.f32.mrb[105].mxu0  ;;  %v4141_v42 = vpop.f32.mrb[137].mxu1 }
 0x3b8   : > { %v4030_v37 = vadd.f32 %v4029_v8, %v4028_v23  ;;  %v4142_v30 = vadd.f32 %v4141_v42, %v4140_v53  ;;  %v4031_v45 = vpop.f32.mrb[106].mxu0  ;;  %v4143_v29 = vpop.f32.mrb[138].mxu1  ;;  %v3272_v13 = vadd.bf16 %v5662_v16, %v3248_v26 }
 0x3b9   : > { %v4032_v20 = vpop.f32.mrb[107].mxu0  ;;  %v4144_v62 = vpop.f32.mrb[139].mxu1 }
 0x3ba   : > { %v3221_v7 = vadd.f32 %v4142_v30, %v4030_v37  ;;  %v4033_v1 = vadd.f32 %v4032_v20, %v4031_v45  ;;  %v4145_v28 = vadd.f32 %v4144_v62, %v4143_v29  ;;  %v3288_v11 = vmax.bf16 %v4542_v2, %v3272_v13 }
 0x3bc   : > { %v3224_v49 = vadd.f32 %v4145_v28, %v4033_v1  ;;  %4217 = vmatmul.mubr.bf16.gmra.mrb[136].mxu0 %v3288_v11 }
 0x3be   : > { %v3249_v21 = vpack.c.bf16 %v3224_v49, %v3221_v7  ;;  %v4034_v46 = vpop.f32.mrb[108].mxu0  ;;  %v4146_v33 = vpop.f32.mrb[140].mxu1 }
 0x3bf   : > { %v4035_v39 = vpop.f32.mrb[109].mxu0  ;;  %v4147_v3 = vpop.f32.mrb[141].mxu1 }
 0x3c0   : > { %v4036_v40 = vadd.f32 %v4035_v39, %v4034_v46  ;;  %v4148_v58 = vadd.f32 %v4147_v3, %v4146_v33  ;;  %v4037_v5 = vpop.f32.mrb[110].mxu0  ;;  %v4149_v12 = vpop.f32.mrb[142].mxu1  ;;  %v3273_v31 = vadd.bf16 %v5662_v16, %v3249_v21 }
 0x3c1   : > { %v4038_v18 = vpop.f32.mrb[111].mxu0  ;;  %v4150_v52 = vpop.f32.mrb[143].mxu1 }
 0x3c2   : > { %v3229_v60 = vadd.f32 %v4148_v58, %v4036_v40  ;;  %v4039_v17 = vadd.f32 %v4038_v18, %v4037_v5  ;;  %v4151_v51 = vadd.f32 %v4150_v52, %v4149_v12  ;;  %v3289_v35 = vmax.bf16 %v4542_v2, %v3273_v31 }
 0x3c4   : > { %v3232_v0 = vadd.f32 %v4151_v51, %v4039_v17  ;;  %4220 = vmatprep.mubr.bf16.mxu0 %v3289_v35 }
 0x3c6   : > { %v3250_v9 = vpack.c.bf16 %v3232_v0, %v3229_v60 }
 0x3c8   : > { %v3274_v41 = vadd.bf16 %v5662_v16, %v3250_v9 }
 0x3ca   : > { %v3290_v32 = vmax.bf16 %v4542_v2, %v3274_v41 }
 0x3cc   : > { %4221 = vmatmul.mubr.bf16.gmra.mrb[140].mxu0 %v3290_v32 }
 0x3d1   : > { %v4194_v27 = vpop.f32.mrb[112].mxu0 }
 0x3d2   : > { %v3389_v14 = vpop.f32.mrb[113].mxu0 }
 0x3d3   : > { %v4195_v54 = vpop.f32.mrb[114].mxu0 }
 0x3d4   : > { %v3517_v4 = vpack.c.bf16 %v4195_v54, %v4194_v27  ;;  %v3392_v50 = vpop.f32.mrb[115].mxu0 }
 0x3d5   : > { %v3516_v16 = vpack.c.bf16 %v3392_v50, %v3389_v14 }
 0x3d6   : > { %v3541_v2 = vadd.bf16 %v5701_v43, %v3517_v4 }
 0x3d7   : > { %v3540_v55 = vadd.bf16 %v5701_v43, %v3516_v16 }
 0x3d8   : > { %v3892_v56 = vcombine.low %v3541_v2, %v3541_v2  ;;  %v3893_v59 = vcombine.high %v3541_v2, %v3541_v2 }
 0x3d9   : > { %v3890_v61 = vcombine.low %v3540_v55, %v3540_v55  ;;  %v3891_v44 = vcombine.high %v3540_v55, %v3540_v55 }
 0x3da   : > { %3670 = vst [vmem:[%s5707_s14 + $0x8] sm:$0xf] %v3892_v56  ;;  %3671 = vst [vmem:[%s5707_s14 + $0xc] sm:$0xf] %v3893_v59 }
 0x3db   : > { %3668 = vst [vmem:[%s5707_s14] sm:$0xf] %v3890_v61  ;;  %3669 = vst [vmem:[%s5707_s14 + $0x4] sm:$0xf] %v3891_v44 }
 0x3e7   : > { %v4198_v57 = vpop.f32.mrb[116].mxu0 }
 0x3e8   : > { %v3405_v24 = vpop.f32.mrb[117].mxu0 }
 0x3e9   : > { %v4199_v25 = vpop.f32.mrb[118].mxu0 }
 0x3ea   : > { %v3519_v6 = vpack.c.bf16 %v4199_v25, %v4198_v57  ;;  %v3408_v47 = vpop.f32.mrb[119].mxu0 }
 0x3eb   : > { %v3518_v15 = vpack.c.bf16 %v3408_v47, %v3405_v24 }
 0x3ec   : > { %v3543_v38 = vadd.bf16 %v5701_v43, %v3519_v6 }
 0x3ed   : > { %v3542_v10 = vadd.bf16 %v5701_v43, %v3518_v15 }
 0x3ee   : > { %v3896_v36 = vcombine.low %v3543_v38, %v3543_v38  ;;  %v3897_v19 = vcombine.high %v3543_v38, %v3543_v38 }
 0x3ef   : > { %v3894_v48 = vcombine.low %v3542_v10, %v3542_v10  ;;  %v3895_v22 = vcombine.high %v3542_v10, %v3542_v10 }
 0x3f0   : > { %3674 = vst [vmem:[%s5707_s14 + $0x18] sm:$0xf] %v3896_v36  ;;  %3675 = vst [vmem:[%s5707_s14 + $0x1c] sm:$0xf] %v3897_v19 }
 0x3f1   : > { %3672 = vst [vmem:[%s5707_s14 + $0x10] sm:$0xf] %v3894_v48  ;;  %3673 = vst [vmem:[%s5707_s14 + $0x14] sm:$0xf] %v3895_v22 }
 0x40d   : > { %v4202_v26 = vpop.f32.mrb[120].mxu0 }
 0x40e   : > { %v3421_v23 = vpop.f32.mrb[121].mxu0 }
 0x40f   : > { %v4203_v53 = vpop.f32.mrb[122].mxu0 }
 0x410   : > { %v3521_v8 = vpack.c.bf16 %v4203_v53, %v4202_v26  ;;  %v3424_v42 = vpop.f32.mrb[123].mxu0 }
 0x411   : > { %v3520_v37 = vpack.c.bf16 %v3424_v42, %v3421_v23 }
 0x412   : > { %v3545_v30 = vadd.bf16 %v5701_v43, %v3521_v8 }
 0x413   : > { %v3544_v45 = vadd.bf16 %v5701_v43, %v3520_v37 }
 0x414   : > { %v3900_v29 = vcombine.low %v3545_v30, %v3545_v30  ;;  %v3901_v13 = vcombine.high %v3545_v30, %v3545_v30 }
 0x415   : > { %v3898_v20 = vcombine.low %v3544_v45, %v3544_v45  ;;  %v3899_v62 = vcombine.high %v3544_v45, %v3544_v45 }
 0x416   : > { %3678 = vst [vmem:[%s5707_s14 + $0x28] sm:$0xf] %v3900_v29  ;;  %3679 = vst [vmem:[%s5707_s14 + $0x2c] sm:$0xf] %v3901_v13 }
 0x417   : > { %3676 = vst [vmem:[%s5707_s14 + $0x20] sm:$0xf] %v3898_v20  ;;  %3677 = vst [vmem:[%s5707_s14 + $0x24] sm:$0xf] %v3899_v62 }
 0x433   : > { %v4206_v7 = vpop.f32.mrb[124].mxu0 }
 0x434   : > { %v3437_v1 = vpop.f32.mrb[125].mxu0 }
 0x435   : > { %v4207_v28 = vpop.f32.mrb[126].mxu0 }
 0x436   : > { %v3523_v11 = vpack.c.bf16 %v4207_v28, %v4206_v7  ;;  %v3440_v49 = vpop.f32.mrb[127].mxu0 }
 0x437   : > { %v3522_v21 = vpack.c.bf16 %v3440_v49, %v3437_v1 }
 0x438   : > { %v3547_v46 = vadd.bf16 %v5701_v43, %v3523_v11 }
 0x439   : > { %v3546_v33 = vadd.bf16 %v5701_v43, %v3522_v21 }
 0x43a   : > { %v3904_v39 = vcombine.low %v3547_v46, %v3547_v46  ;;  %v3905_v3 = vcombine.high %v3547_v46, %v3547_v46 }
 0x43b   : > { %v3902_v40 = vcombine.low %v3546_v33, %v3546_v33  ;;  %v3903_v58 = vcombine.high %v3546_v33, %v3546_v33 }
 0x43c   : > { %3682 = vst [vmem:[%s5707_s14 + $0x38] sm:$0xf] %v3904_v39  ;;  %3683 = vst [vmem:[%s5707_s14 + $0x3c] sm:$0xf] %v3905_v3 }
 0x43d   : > { %3680 = vst [vmem:[%s5707_s14 + $0x30] sm:$0xf] %v3902_v40  ;;  %3681 = vst [vmem:[%s5707_s14 + $0x34] sm:$0xf] %v3903_v58 }
 0x459   : > { %v4210_v5 = vpop.f32.mrb[128].mxu0 }
 0x45a   : > { %v3453_v12 = vpop.f32.mrb[129].mxu0 }
 0x45b   : > { %v4211_v31 = vpop.f32.mrb[130].mxu0 }
 0x45c   : > { %v3525_v18 = vpack.c.bf16 %v4211_v31, %v4210_v5  ;;  %v3456_v52 = vpop.f32.mrb[131].mxu0 }
 0x45d   : > { %v3524_v60 = vpack.c.bf16 %v3456_v52, %v3453_v12 }
 0x45e   : > { %v3549_v17 = vadd.bf16 %v5701_v43, %v3525_v18 }
 0x45f   : > { %v3548_v51 = vadd.bf16 %v5701_v43, %v3524_v60 }
 0x460   : > { %v3908_v35 = vcombine.low %v3549_v17, %v3549_v17  ;;  %v3909_v0 = vcombine.high %v3549_v17, %v3549_v17 }
 0x461   : > { %v3906_v9 = vcombine.low %v3548_v51, %v3548_v51  ;;  %v3907_v41 = vcombine.high %v3548_v51, %v3548_v51 }
 0x462   : > { %3686 = vst [vmem:[%s5707_s14 + $0x48] sm:$0xf] %v3908_v35  ;;  %3687 = vst [vmem:[%s5707_s14 + $0x4c] sm:$0xf] %v3909_v0 }
 0x463   : > { %3684 = vst [vmem:[%s5707_s14 + $0x40] sm:$0xf] %v3906_v9  ;;  %3685 = vst [vmem:[%s5707_s14 + $0x44] sm:$0xf] %v3907_v41 }
 0x47f   : > { %v4214_v32 = vpop.f32.mrb[132].mxu0 }
 0x480   : > { %v3469_v34 = vpop.f32.mrb[133].mxu0 }
 0x481   : > { %v4215_v63 = vpop.f32.mrb[134].mxu0 }
 0x482   : > { %v3527_v27 = vpack.c.bf16 %v4215_v63, %v4214_v32  ;;  %v3472_v14 = vpop.f32.mrb[135].mxu0 }
 0x483   : > { %v3526_v54 = vpack.c.bf16 %v3472_v14, %v3469_v34 }
 0x484   : > { %v3551_v4 = vadd.bf16 %v5701_v43, %v3527_v27 }
 0x485   : > { %v3550_v50 = vadd.bf16 %v5701_v43, %v3526_v54 }
 0x486   : > { %v3912_v16 = vcombine.low %v3551_v4, %v3551_v4  ;;  %v3913_v2 = vcombine.high %v3551_v4, %v3551_v4 }
 0x487   : > { %v3910_v55 = vcombine.low %v3550_v50, %v3550_v50  ;;  %v3911_v56 = vcombine.high %v3550_v50, %v3550_v50 }
 0x488   : > { %3690 = vst [vmem:[%s5707_s14 + $0x58] sm:$0xf] %v3912_v16  ;;  %3691 = vst [vmem:[%s5707_s14 + $0x5c] sm:$0xf] %v3913_v2 }
 0x489   : > { %3688 = vst [vmem:[%s5707_s14 + $0x50] sm:$0xf] %v3910_v55  ;;  %3689 = vst [vmem:[%s5707_s14 + $0x54] sm:$0xf] %v3911_v56 }
 0x48f   : > { %v4218_v59 = vpop.f32.mrb[136].mxu0 }
 0x490   : > { %v3485_v61 = vpop.f32.mrb[137].mxu0 }
 0x491   : > { %v4219_v44 = vpop.f32.mrb[138].mxu0 }
 0x492   : > { %v3529_v57 = vpack.c.bf16 %v4219_v44, %v4218_v59  ;;  %v3488_v24 = vpop.f32.mrb[139].mxu0 }
 0x493   : > { %v3528_v25 = vpack.c.bf16 %v3488_v24, %v3485_v61 }
 0x494   : > { %v3553_v6 = vadd.bf16 %v5701_v43, %v3529_v57 }
 0x495   : > { %v3552_v47 = vadd.bf16 %v5701_v43, %v3528_v25 }
 0x496   : > { %v3916_v15 = vcombine.low %v3553_v6, %v3553_v6  ;;  %v3917_v38 = vcombine.high %v3553_v6, %v3553_v6 }
 0x497   : > { %v3914_v10 = vcombine.low %v3552_v47, %v3552_v47  ;;  %v3915_v36 = vcombine.high %v3552_v47, %v3552_v47 }
 0x498   : > { %3694 = vst [vmem:[%s5707_s14 + $0x68] sm:$0xf] %v3916_v15  ;;  %3695 = vst [vmem:[%s5707_s14 + $0x6c] sm:$0xf] %v3917_v38 }
 0x499   : > { %3692 = vst [vmem:[%s5707_s14 + $0x60] sm:$0xf] %v3914_v10  ;;  %3693 = vst [vmem:[%s5707_s14 + $0x64] sm:$0xf] %v3915_v36 }
 0x49f   : > { %v4222_v19 = vpop.f32.mrb[140].mxu0 }
 0x4a0   : > { %v3501_v48 = vpop.f32.mrb[141].mxu0 }
 0x4a1   : > { %v4223_v22 = vpop.f32.mrb[142].mxu0 }
 0x4a2   : > { %v3531_v26 = vpack.c.bf16 %v4223_v22, %v4222_v19  ;;  %v3504_v23 = vpop.f32.mrb[143].mxu0 }
 0x4a3   : > { %v3530_v53 = vpack.c.bf16 %v3504_v23, %v3501_v48 }
 0x4a4   : > { %v3555_v8 = vadd.bf16 %v5701_v43, %v3531_v26 }
 0x4a5   : > { %v3554_v42 = vadd.bf16 %v5701_v43, %v3530_v53 }
 0x4a6   : > { %v3920_v37 = vcombine.low %v3555_v8, %v3555_v8  ;;  %v3921_v30 = vcombine.high %v3555_v8, %v3555_v8 }
 0x4a7   : > { %v3918_v45 = vcombine.low %v3554_v42, %v3554_v42  ;;  %v3919_v29 = vcombine.high %v3554_v42, %v3554_v42 }
 0x4a8   : > { %3698 = vst [vmem:[%s5707_s14 + $0x78] sm:$0xf] %v3920_v37  ;;  %3699 = vst [vmem:[%s5707_s14 + $0x7c] sm:$0xf] %v3921_v30 }
 0x4a9   : > { %3696 = vst [vmem:[%s5707_s14 + $0x70] sm:$0xf] %v3918_v45  ;;  %3697 = vst [vmem:[%s5707_s14 + $0x74] sm:$0xf] %v3919_v29 }
 0x4aa   : > { %4482 = shalt.err (!%p4479_p7)
}
 0x4ab   : > { %s4483_s23 = scalar_lea.hbm %s5756_s25, 2048  ;;  %s4487_s16 = scalar_lea.hbm %s5816_s9, 8192 }
 0x4ac   : > { %p4484_p8 = scmp.ne.s32.totalorder %s5756_s25, %s4483_s23  ;;  %p4488_p1 = scmp.lt.u32.totalorder %s5756_s25, %s5816_s9 }
 0x4ad   : > { %p4489_p0 = scmp.lt.u32.totalorder %s4487_s16, %s4483_s23  ;;  %p4491_p6 = scmp.lt.u32.totalorder %s4483_s23, %s5756_s25 }
 0x4ae   : > { %p4485_p11 = pnand %p4484_p8, %p5827_p9 }
 0x4af   : > { %p4490_p5 = por %p4489_p0, %p4488_p1 }
 0x4b0   : > { %p4486_p13 = pneg %p4485_p11 }
 0x4b1   : > { %p4492_p10 = por %p4491_p6, %p4490_p5 }
 0x4b3   : > { %p4493_p12 = pnand %p4492_p10, %p4486_p13 }
 0x4b5   : > { %4496 = shalt.err (!%p4493_p12)
}
 0x4b6   : > { %s4546_s26 = smov 64   ;;  %s4547_s28 = smov 4  }
 0x4b7   : > { %4244 = dma.vmem_to_hbm [thread:$0]  (%p5827_p9), %s5758_s29, 2048, %s5756_s25, %s5766_s13, %s4546_s26, %s4546_s26, %s4547_s28  }
 0x4b8 PF: > { %p4256_p2 = scmp.ge.s32.totalorder %s4535_s12, 2  ;;  %s3729_s27 = sand.u32 1, %s4523_s30  }
 0x4b9   : > { %p5828_p3 = scmp.ne.s32.totalorder %s5821_s20, 0  ;;  %s3730_s21 = scalar_lea.sflag [#allocation4], %s3729_s27 }
 0x4bb   : > { %p4251_p4 = pnand %p4256_p2, %p5828_p3 }
 0x4bd   : > { %4518 = dma.done.wait (!%p4251_p4), %s3730_s21, 2048  }
 0x4be   : > { %4520 = vsyncadd (!%p4251_p4), %s3730_s21, 4294965248  ;;  %p20_p7 = scmp.ge.s32.totalorder %s4623_s15, 6   ;;  %s5829_s30 = smov %s4527_s10 }
 0x4bf   : > { %s5830_s10 = smov %s4531_s11  ;;  %s5831_s11 = smov %s4634_s18 }
 0x4c0   : > { %s5832_s12 = smov %s4623_s15  ;;  %22 = sbr.rel (!%p20_p7) target bundleno = 4 (0x4), region = 96 }
 0x4c7   :  { %3735 = vsyncpa [#allocation3], 1 }
 0x4c8   :  { %3737 = vsyncpa [#allocation3 + $0x1], 1 }
 0x4c9   :  { %3738 = vsyncpa [#allocation4], 1 }
 0x4ca   :  { %3740 = vsyncpa [#allocation4 + $0x1], 1 }

</bundles_post_ra>
